<compile_context>
chip_gen: v5e
topology: v5e:2x2
jax: 0.10.0
libtpu: 0.0.40
codegen_flags: <defaults>
</compile_context>

<pallas_src>
import math

import jax
import jax.numpy as jnp
from jax.experimental import pallas as pl
from jax.experimental.pallas import tpu as pltpu

# Keep the pure-JAX reference matmuls at full f32 precision so the MXU kernel
# and the reference agree tightly.
jax.config.update("jax_default_matmul_precision", "highest")

# ---- module hyperparameters (small, consistent with the forward) ----
BATCH = 2
SEQ = 8
EMBED_DIM = 32
NUM_HEADS = 4
HEAD_DIM = EMBED_DIM // NUM_HEADS
FF_DIM = 64
LN_EPS = 1e-5

# Row layout of the packed vector-parameter array (each row padded to 4*E lanes).
_ROW_B_IN = 0    # [bq | bk | bv | b_hw1]  (4E wide)
_ROW_BO = 1      # out_proj bias           (E)
_ROW_LN1_G = 2
_ROW_LN1_B = 3
_ROW_FF_B1 = 4   # feed-forward bias 1     (FF)
_ROW_HW2_B = 5
_ROW_FF_B2 = 6
_ROW_LN2_G = 7
_ROW_LN2_B = 8
_NUM_VEC_ROWS = 9


# ----------------------------------------------------------------------------
# Fused kernel: one grid step == one batch element (S, E) of the full layer.
# ----------------------------------------------------------------------------
def encoder_layer_kernel(x_ref, w_in_ref, wo_ref, w_mid_ref, ffw2_ref, vec_ref,
                         o_ref):
    E, D, H, FF = EMBED_DIM, HEAD_DIM, NUM_HEADS, FF_DIM

    x = x_ref[...]                                            # (S, E)

    # ---- fused [Q | K | V | highway-1 gate] projection: one lane-dense
    #      (S, 4E=128) MXU push instead of four separate matmuls. ----
    zg = jnp.dot(x, w_in_ref[...],
                 preferred_element_type=jnp.float32) + vec_ref[_ROW_B_IN:_ROW_B_IN + 1, :]

    g1 = jax.nn.sigmoid(zg[:, 3 * E:4 * E])                   # highway-1 gate (from x)

    # ---- heads to a leading batch axis: (H, S, D) via static lane slices. ----
    qh = jnp.stack([zg[:, h * D:(h + 1) * D] for h in range(H)], axis=0)
    kh = jnp.stack([zg[:, E + h * D:E + (h + 1) * D] for h in range(H)], axis=0)
    vh = jnp.stack([zg[:, 2 * E + h * D:2 * E + (h + 1) * D] for h in range(H)], axis=0)

    # ---- head-batched attention: two batched contractions, exact softmax. ----
    s = jnp.einsum("hqd,hkd->hqk", qh, kh,
                   preferred_element_type=jnp.float32) * (1.0 / math.sqrt(D))
    s = s - jnp.max(s, axis=-1, keepdims=True)
    p_attn = jnp.exp(s)
    p_attn = p_attn / jnp.sum(p_attn, axis=-1, keepdims=True)  # exact divide
    ctx = jnp.einsum("hqk,hkd->hqd", p_attn, vh,
                     preferred_element_type=jnp.float32)       # (H, S, D)

    # ---- reassemble heads along lanes, then ONE (S,E)@(E,E) output proj. ----
    ao = jnp.concatenate([ctx[h] for h in range(H)], axis=1)   # (S, E)
    attn = jnp.dot(ao, wo_ref[...],
                   preferred_element_type=jnp.float32) + vec_ref[_ROW_BO:_ROW_BO + 1, :E]

    def layernorm(y, g, b):
        mu = jnp.mean(y, axis=-1, keepdims=True)
        var = jnp.mean(jnp.square(y - mu), axis=-1, keepdims=True)
        return (y - mu) * jax.lax.rsqrt(var + LN_EPS) * g + b

    # ---- LayerNorm1 + Highway1 (gated residual, gate from x) ----
    y1 = layernorm(attn, vec_ref[_ROW_LN1_G:_ROW_LN1_G + 1, :E],
                   vec_ref[_ROW_LN1_B:_ROW_LN1_B + 1, :E])
    x1 = g1 * y1 + (1.0 - g1) * x

    # ---- fused [FFN-1 | highway-2 gate] matmul on x1: one (S, FF+E=96) push ----
    mid = jnp.dot(x1, w_mid_ref[...], preferred_element_type=jnp.float32)
    hdn = jnp.maximum(mid[:, :FF] + vec_ref[_ROW_FF_B1:_ROW_FF_B1 + 1, :FF], 0.0)
    g2 = jax.nn.sigmoid(mid[:, FF:FF + E] + vec_ref[_ROW_HW2_B:_ROW_HW2_B + 1, :E])

    # ---- FFN second layer ----
    ff = jnp.dot(hdn, ffw2_ref[...],
                 preferred_element_type=jnp.float32) + vec_ref[_ROW_FF_B2:_ROW_FF_B2 + 1, :E]

    # ---- LayerNorm2 + Highway2 ----
    y2 = layernorm(ff, vec_ref[_ROW_LN2_G:_ROW_LN2_G + 1, :E],
                   vec_ref[_ROW_LN2_B:_ROW_LN2_B + 1, :E])
    o_ref[...] = g2 * y2 + (1.0 - g2) * x1


# ----------------------------------------------------------------------------
# Wrapper: pack weights/vectors outside the kernel, grid over batch.
# ----------------------------------------------------------------------------
def transformer_encoder_layer(x, p):
    B, S, E = x.shape
    lane_w = 4 * E

    # fused projection weights / biases built once per call (tiny host-side ops)
    w_in = jnp.concatenate([p["wq"], p["wk"], p["wv"], p["hw1_w"]], axis=1)   # (E, 4E)
    b_in = jnp.concatenate([p["bq"], p["bk"], p["bv"], p["hw1_b"]], axis=1)   # (1, 4E)
    w_mid = jnp.concatenate([p["ff_w1"], p["hw2_w"]], axis=1)                 # (E, FF+E)

    def row(v):  # pad each small vector to a full 128-lane row
        return jnp.pad(v, ((0, 0), (0, lane_w - v.shape[1])))

    vecs = jnp.concatenate([
        row(b_in), row(p["bo"]), row(p["ln1_g"]), row(p["ln1_b"]),
        row(p["ff_b1"]), row(p["hw2_b"]), row(p["ff_b2"]),
        row(p["ln2_g"]), row(p["ln2_b"]),
    ], axis=0)                                                                # (9, 4E)

    out = pl.pallas_call(
        encoder_layer_kernel,
        out_shape=jax.ShapeDtypeStruct((B, S, E), jnp.float32),
        grid=(B,),
        in_specs=[
            pl.BlockSpec((None, S, E), lambda b: (b, 0, 0)),                  # x
            pl.BlockSpec((E, 4 * E), lambda b: (0, 0)),                       # [Wq|Wk|Wv|Whw1]
            pl.BlockSpec((E, E), lambda b: (0, 0)),                           # Wo
            pl.BlockSpec((E, FF_DIM + E), lambda b: (0, 0)),                  # [Wff1|Whw2]
            pl.BlockSpec((FF_DIM, E), lambda b: (0, 0)),                      # Wff2
            pl.BlockSpec((_NUM_VEC_ROWS, 4 * E), lambda b: (0, 0)),           # packed vectors
        ],
        out_specs=pl.BlockSpec((None, S, E), lambda b: (b, 0, 0)),
        compiler_params=pltpu.CompilerParams(
            dimension_semantics=("parallel",),       # shard batch across v7x's 2 TCs
            vmem_limit_bytes=32 * 1024 * 1024,       # raise v5e's 16 MiB scoped default
        ),
    )(x, w_in, p["wo"], w_mid, p["ff_w2"], vecs)
    return out


# ----------------------------------------------------------------------------
# Deterministic parameter init (PyTorch-Linear-style uniform bounds).
# Weights stored as (in_features, out_features); biases as (1, out_features).
# ----------------------------------------------------------------------------
def init_params(key):
    def linear(k, fan_in, fan_out):
        kw, kb = jax.random.split(k)
        bound = 1.0 / math.sqrt(fan_in)
        w = jax.random.uniform(kw, (fan_in, fan_out), jnp.float32, -bound, bound)
        b = jax.random.uniform(kb, (1, fan_out), jnp.float32, -bound, bound)
        return w, b

    ks = jax.random.split(key, 9)
    p = {}
    p["wq"], p["bq"] = linear(ks[0], EMBED_DIM, EMBED_DIM)
    p["wk"], p["bk"] = linear(ks[1], EMBED_DIM, EMBED_DIM)
    p["wv"], p["bv"] = linear(ks[2], EMBED_DIM, EMBED_DIM)
    p["wo"], p["bo"] = linear(ks[3], EMBED_DIM, EMBED_DIM)
    p["ff_w1"], p["ff_b1"] = linear(ks[4], EMBED_DIM, FF_DIM)
    p["ff_w2"], p["ff_b2"] = linear(ks[5], FF_DIM, EMBED_DIM)
    p["hw1_w"], p["hw1_b"] = linear(ks[6], EMBED_DIM, EMBED_DIM)
    p["hw2_w"], p["hw2_b"] = linear(ks[7], EMBED_DIM, EMBED_DIM)
    p["ln1_g"] = jnp.ones((1, EMBED_DIM), jnp.float32)
    p["ln1_b"] = jnp.zeros((1, EMBED_DIM), jnp.float32)
    p["ln2_g"] = jnp.ones((1, EMBED_DIM), jnp.float32)
    p["ln2_b"] = jnp.zeros((1, EMBED_DIM), jnp.float32)
    return p


# ----------------------------------------------------------------------------
# Pure-JAX reference (mirrors the PyTorch forward, mask=None path).
# ----------------------------------------------------------------------------
def ref_forward(x, p):
    B, S, E = x.shape

    def lin(a, w, b):
        return a @ w + b[0]

    q = lin(x, p["wq"], p["bq"]).reshape(B, S, NUM_HEADS, HEAD_DIM).transpose(0, 2, 1, 3)
    k = lin(x, p["wk"], p["bk"]).reshape(B, S, NUM_HEADS, HEAD_DIM).transpose(0, 2, 1, 3)
    v = lin(x, p["wv"], p["bv"]).reshape(B, S, NUM_HEADS, HEAD_DIM).transpose(0, 2, 1, 3)
    scores = (q @ k.transpose(0, 1, 3, 2)) / math.sqrt(HEAD_DIM)
    attw = jax.nn.softmax(scores, axis=-1)
    ao = (attw @ v).transpose(0, 2, 1, 3).reshape(B, S, E)
    attn_out = lin(ao, p["wo"], p["bo"])

    def layernorm(y, g, b):
        mu = y.mean(-1, keepdims=True)
        var = ((y - mu) ** 2).mean(-1, keepdims=True)
        return (y - mu) / jnp.sqrt(var + LN_EPS) * g[0] + b[0]

    def highway(xv, yv, w, b):
        gate = jax.nn.sigmoid(xv @ w + b[0])
        return gate * yv + (1.0 - gate) * xv

    x1 = highway(x, layernorm(attn_out, p["ln1_g"], p["ln1_b"]), p["hw1_w"], p["hw1_b"])
    ff = jnp.maximum(lin(x1, p["ff_w1"], p["ff_b1"]), 0.0) @ p["ff_w2"] + p["ff_b2"][0]
    x2 = highway(x1, layernorm(ff, p["ln2_g"], p["ln2_b"]), p["hw2_w"], p["hw2_b"])
    return x2


if __name__ == "__main__":
    key = jax.random.PRNGKey(0)
    kx, kp = jax.random.split(key)
    x = jax.random.normal(kx, (BATCH, SEQ, EMBED_DIM), dtype=jnp.float32)
    params = init_params(kp)

    fwd = jax.jit(transformer_encoder_layer)
    out = fwd(x, params)
    out = jax.block_until_ready(out)

    ref = ref_forward(x, params)
    assert out.shape == (BATCH, SEQ, EMBED_DIM)
    max_err = float(jnp.max(jnp.abs(out - ref)))
    assert jnp.allclose(out, ref, atol=1e-3, rtol=1e-3), max_err

    print("KERNEL_OK")
</pallas_src>

<mosaic_0001>
module attributes {stable_mosaic.version = 11 : i64} {
  func.func @encoder_layer_kernel(%arg0: i32, %arg1: memref<1x8x32xf32, #tpu.memory_space<vmem>>, %arg2: memref<32x128xf32, #tpu.memory_space<vmem>>, %arg3: memref<32x32xf32, #tpu.memory_space<vmem>>, %arg4: memref<32x96xf32, #tpu.memory_space<vmem>>, %arg5: memref<64x32xf32, #tpu.memory_space<vmem>>, %arg6: memref<9x128xf32, #tpu.memory_space<vmem>>, %arg7: memref<1x8x32xf32, #tpu.memory_space<vmem>>) attributes {dimension_semantics = [#tpu.dimension_semantics<parallel>], iteration_bounds = array<i64: 2>, scalar_prefetch = 0 : i64, scratch_operands = 0 : i64, tpu.core_type = #tpu.core_type<tc>, window_params = [{transform_indices = @transform_0, window_bounds = array<i64: 1, 8, 32>}, {pipeline_mode = #tpu.pipeline_mode<synchronous>, transform_indices = @transform_1, window_bounds = array<i64: 32, 128>}, {pipeline_mode = #tpu.pipeline_mode<synchronous>, transform_indices = @transform_2, window_bounds = array<i64: 32, 32>}, {pipeline_mode = #tpu.pipeline_mode<synchronous>, transform_indices = @transform_3, window_bounds = array<i64: 32, 96>}, {pipeline_mode = #tpu.pipeline_mode<synchronous>, transform_indices = @transform_4, window_bounds = array<i64: 64, 32>}, {pipeline_mode = #tpu.pipeline_mode<synchronous>, transform_indices = @transform_5, window_bounds = array<i64: 9, 128>}, {transform_indices = @transform_6, window_bounds = array<i64: 1, 8, 32>}]} {
    %c0 = arith.constant 0 : index
    %c0_0 = arith.constant 0 : index
    %c0_1 = arith.constant 0 : index
    %0 = vector.load %arg1[%c0, %c0_0, %c0_1] : memref<1x8x32xf32, #tpu.memory_space<vmem>>, vector<1x8x32xf32>
    %1 = vector.shape_cast %0 : vector<1x8x32xf32> to vector<8x32xf32>
    %c0_2 = arith.constant 0 : index
    %c0_3 = arith.constant 0 : index
    %2 = vector.load %arg2[%c0_2, %c0_3] : memref<32x128xf32, #tpu.memory_space<vmem>>, vector<32x128xf32>
    %cst = arith.constant dense<0.000000e+00> : vector<8x128xf32>
    %3 = tpu.matmul %1, %2, %cst {dimension_numbers = #tpu.dot_dimension_numbers<[1], [0], [0], [1], [0, 0, 1, 1], [], []>, precision = #tpu.contract_precision<fp32>} : vector<8x32xf32>, vector<32x128xf32>, vector<8x128xf32> -> vector<8x128xf32>
    %c0_4 = arith.constant 0 : index
    %c0_5 = arith.constant 0 : index
    %4 = vector.load %arg6[%c0_4, %c0_5] : memref<9x128xf32, #tpu.memory_space<vmem>>, vector<1x128xf32>
    %5 = vector.broadcast %4 : vector<1x128xf32> to vector<8x128xf32>
    %6 = arith.addf %3, %5 : vector<8x128xf32>
    %7 = vector.extract_strided_slice %6 {offsets = [0, 96], sizes = [8, 32], strides = [1, 1]} : vector<8x128xf32> to vector<8x32xf32>
    %8 = arith.negf %7 : vector<8x32xf32>
    %9 = math.exp %8 : vector<8x32xf32>
    %cst_6 = arith.constant 1.000000e+00 : f32
    %10 = vector.broadcast %cst_6 : f32 to vector<8x32xf32>
    %11 = arith.addf %10, %9 : vector<8x32xf32>
    %12 = arith.divf %10, %11 : vector<8x32xf32>
    %13 = vector.extract_strided_slice %6 {offsets = [0, 0], sizes = [8, 8], strides = [1, 1]} : vector<8x128xf32> to vector<8x8xf32>
    %14 = vector.extract_strided_slice %6 {offsets = [0, 8], sizes = [8, 8], strides = [1, 1]} : vector<8x128xf32> to vector<8x8xf32>
    %15 = vector.extract_strided_slice %6 {offsets = [0, 16], sizes = [8, 8], strides = [1, 1]} : vector<8x128xf32> to vector<8x8xf32>
    %16 = vector.extract_strided_slice %6 {offsets = [0, 24], sizes = [8, 8], strides = [1, 1]} : vector<8x128xf32> to vector<8x8xf32>
    %17 = vector.shape_cast %13 : vector<8x8xf32> to vector<1x8x8xf32>
    %18 = vector.shape_cast %14 : vector<8x8xf32> to vector<1x8x8xf32>
    %19 = vector.shape_cast %15 : vector<8x8xf32> to vector<1x8x8xf32>
    %20 = vector.shape_cast %16 : vector<8x8xf32> to vector<1x8x8xf32>
    %21 = tpu.concatenate %17, %18, %19, %20 in 0 : vector<1x8x8xf32>, vector<1x8x8xf32>, vector<1x8x8xf32>, vector<1x8x8xf32> -> vector<4x8x8xf32>
    %22 = vector.extract_strided_slice %6 {offsets = [0, 32], sizes = [8, 8], strides = [1, 1]} : vector<8x128xf32> to vector<8x8xf32>
    %23 = vector.extract_strided_slice %6 {offsets = [0, 40], sizes = [8, 8], strides = [1, 1]} : vector<8x128xf32> to vector<8x8xf32>
    %24 = vector.extract_strided_slice %6 {offsets = [0, 48], sizes = [8, 8], strides = [1, 1]} : vector<8x128xf32> to vector<8x8xf32>
    %25 = vector.extract_strided_slice %6 {offsets = [0, 56], sizes = [8, 8], strides = [1, 1]} : vector<8x128xf32> to vector<8x8xf32>
    %26 = vector.shape_cast %22 : vector<8x8xf32> to vector<1x8x8xf32>
    %27 = vector.shape_cast %23 : vector<8x8xf32> to vector<1x8x8xf32>
    %28 = vector.shape_cast %24 : vector<8x8xf32> to vector<1x8x8xf32>
    %29 = vector.shape_cast %25 : vector<8x8xf32> to vector<1x8x8xf32>
    %30 = tpu.concatenate %26, %27, %28, %29 in 0 : vector<1x8x8xf32>, vector<1x8x8xf32>, vector<1x8x8xf32>, vector<1x8x8xf32> -> vector<4x8x8xf32>
    %31 = vector.extract_strided_slice %6 {offsets = [0, 64], sizes = [8, 8], strides = [1, 1]} : vector<8x128xf32> to vector<8x8xf32>
    %32 = vector.extract_strided_slice %6 {offsets = [0, 72], sizes = [8, 8], strides = [1, 1]} : vector<8x128xf32> to vector<8x8xf32>
    %33 = vector.extract_strided_slice %6 {offsets = [0, 80], sizes = [8, 8], strides = [1, 1]} : vector<8x128xf32> to vector<8x8xf32>
    %34 = vector.extract_strided_slice %6 {offsets = [0, 88], sizes = [8, 8], strides = [1, 1]} : vector<8x128xf32> to vector<8x8xf32>
    %35 = vector.shape_cast %31 : vector<8x8xf32> to vector<1x8x8xf32>
    %36 = vector.shape_cast %32 : vector<8x8xf32> to vector<1x8x8xf32>
    %37 = vector.shape_cast %33 : vector<8x8xf32> to vector<1x8x8xf32>
    %38 = vector.shape_cast %34 : vector<8x8xf32> to vector<1x8x8xf32>
    %39 = tpu.concatenate %35, %36, %37, %38 in 0 : vector<1x8x8xf32>, vector<1x8x8xf32>, vector<1x8x8xf32>, vector<1x8x8xf32> -> vector<4x8x8xf32>
    "tpu.trace_start"() <{level = 10 : i32, message = "hqd,hkd->hqk"}> : () -> ()
    %cst_7 = arith.constant dense<0.000000e+00> : vector<4x8x8xf32>
    %40 = tpu.matmul %21, %30, %cst_7 {dimension_numbers = #tpu.dot_dimension_numbers<[2], [2], [1], [1], [0, 0, 0, 1, 1, 1], [0], [0]>, precision = #tpu.contract_precision<fp32>} : vector<4x8x8xf32>, vector<4x8x8xf32>, vector<4x8x8xf32> -> vector<4x8x8xf32>
    "tpu.trace_stop"() : () -> ()
    %cst_8 = arith.constant 0.353553385 : f32
    %41 = vector.broadcast %cst_8 : f32 to vector<4x8x8xf32>
    %42 = arith.mulf %40, %41 : vector<4x8x8xf32>
    %cst_9 = arith.constant dense<0xFF800000> : vector<4x8xf32>
    %43 = vector.multi_reduction <maximumf>, %42, %cst_9 [2] : vector<4x8x8xf32> to vector<4x8xf32>
    %44 = vector.shape_cast %43 : vector<4x8xf32> to vector<4x8x1xf32>
    %45 = vector.broadcast %44 : vector<4x8x1xf32> to vector<4x8x8xf32>
    %46 = arith.subf %42, %45 : vector<4x8x8xf32>
    %47 = math.exp %46 : vector<4x8x8xf32>
    %cst_10 = arith.constant dense<0.000000e+00> : vector<4x8xf32>
    %48 = vector.multi_reduction <add>, %47, %cst_10 [2] : vector<4x8x8xf32> to vector<4x8xf32>
    %49 = vector.shape_cast %48 : vector<4x8xf32> to vector<4x8x1xf32>
    %50 = vector.broadcast %49 : vector<4x8x1xf32> to vector<4x8x8xf32>
    %51 = arith.divf %47, %50 : vector<4x8x8xf32>
    "tpu.trace_start"() <{level = 10 : i32, message = "hqk,hkd->hqd"}> : () -> ()
    %cst_11 = arith.constant dense<0.000000e+00> : vector<4x8x8xf32>
    %52 = tpu.matmul %51, %39, %cst_11 {dimension_numbers = #tpu.dot_dimension_numbers<[2], [1], [1], [2], [0, 0, 0, 1, 1, 2], [0], [0]>, precision = #tpu.contract_precision<fp32>} : vector<4x8x8xf32>, vector<4x8x8xf32>, vector<4x8x8xf32> -> vector<4x8x8xf32>
    "tpu.trace_stop"() : () -> ()
    %53 = vector.extract_strided_slice %52 {offsets = [0, 0, 0], sizes = [1, 8, 8], strides = [1, 1, 1]} : vector<4x8x8xf32> to vector<1x8x8xf32>
    %54 = vector.shape_cast %53 : vector<1x8x8xf32> to vector<8x8xf32>
    %55 = vector.extract_strided_slice %52 {offsets = [1, 0, 0], sizes = [1, 8, 8], strides = [1, 1, 1]} : vector<4x8x8xf32> to vector<1x8x8xf32>
    %56 = vector.shape_cast %55 : vector<1x8x8xf32> to vector<8x8xf32>
    %57 = vector.extract_strided_slice %52 {offsets = [2, 0, 0], sizes = [1, 8, 8], strides = [1, 1, 1]} : vector<4x8x8xf32> to vector<1x8x8xf32>
    %58 = vector.shape_cast %57 : vector<1x8x8xf32> to vector<8x8xf32>
    %59 = vector.extract_strided_slice %52 {offsets = [3, 0, 0], sizes = [1, 8, 8], strides = [1, 1, 1]} : vector<4x8x8xf32> to vector<1x8x8xf32>
    %60 = vector.shape_cast %59 : vector<1x8x8xf32> to vector<8x8xf32>
    %61 = tpu.concatenate %54, %56, %58, %60 in 1 : vector<8x8xf32>, vector<8x8xf32>, vector<8x8xf32>, vector<8x8xf32> -> vector<8x32xf32>
    %c0_12 = arith.constant 0 : index
    %c0_13 = arith.constant 0 : index
    %62 = vector.load %arg3[%c0_12, %c0_13] : memref<32x32xf32, #tpu.memory_space<vmem>>, vector<32x32xf32>
    %cst_14 = arith.constant dense<0.000000e+00> : vector<8x32xf32>
    %63 = tpu.matmul %61, %62, %cst_14 {dimension_numbers = #tpu.dot_dimension_numbers<[1], [0], [0], [1], [0, 0, 1, 1], [], []>, precision = #tpu.contract_precision<fp32>} : vector<8x32xf32>, vector<32x32xf32>, vector<8x32xf32> -> vector<8x32xf32>
    %c1 = arith.constant 1 : index
    %c0_15 = arith.constant 0 : index
    %64 = vector.load %arg6[%c1, %c0_15] : memref<9x128xf32, #tpu.memory_space<vmem>>, vector<1x32xf32>
    %65 = vector.broadcast %64 : vector<1x32xf32> to vector<8x32xf32>
    %66 = arith.addf %63, %65 : vector<8x32xf32>
    %c2 = arith.constant 2 : index
    %c0_16 = arith.constant 0 : index
    %67 = vector.load %arg6[%c2, %c0_16] : memref<9x128xf32, #tpu.memory_space<vmem>>, vector<1x32xf32>
    %c3 = arith.constant 3 : index
    %c0_17 = arith.constant 0 : index
    %68 = vector.load %arg6[%c3, %c0_17] : memref<9x128xf32, #tpu.memory_space<vmem>>, vector<1x32xf32>
    %cst_18 = arith.constant dense<0.000000e+00> : vector<8xf32>
    %69 = vector.multi_reduction <add>, %66, %cst_18 [1] : vector<8x32xf32> to vector<8xf32>
    %70 = vector.shape_cast %69 : vector<8xf32> to vector<8x1xf32>
    %cst_19 = arith.constant 3.200000e+01 : f32
    %71 = vector.broadcast %cst_19 : f32 to vector<8x1xf32>
    %72 = arith.divf %70, %71 : vector<8x1xf32>
    %73 = vector.broadcast %72 : vector<8x1xf32> to vector<8x32xf32>
    %74 = arith.subf %66, %73 : vector<8x32xf32>
    %75 = arith.mulf %74, %74 : vector<8x32xf32>
    %cst_20 = arith.constant dense<0.000000e+00> : vector<8xf32>
    %76 = vector.multi_reduction <add>, %75, %cst_20 [1] : vector<8x32xf32> to vector<8xf32>
    %77 = vector.shape_cast %76 : vector<8xf32> to vector<8x1xf32>
    %cst_21 = arith.constant 3.200000e+01 : f32
    %78 = vector.broadcast %cst_21 : f32 to vector<8x1xf32>
    %79 = arith.divf %77, %78 : vector<8x1xf32>
    %80 = vector.broadcast %72 : vector<8x1xf32> to vector<8x32xf32>
    %81 = arith.subf %66, %80 : vector<8x32xf32>
    %cst_22 = arith.constant 9.99999974E-6 : f32
    %82 = vector.broadcast %cst_22 : f32 to vector<8x1xf32>
    %83 = arith.addf %79, %82 : vector<8x1xf32>
    %84 = math.rsqrt %83 : vector<8x1xf32>
    %85 = vector.broadcast %84 : vector<8x1xf32> to vector<8x32xf32>
    %86 = arith.mulf %81, %85 : vector<8x32xf32>
    %87 = vector.broadcast %67 : vector<1x32xf32> to vector<8x32xf32>
    %88 = arith.mulf %86, %87 : vector<8x32xf32>
    %89 = vector.broadcast %68 : vector<1x32xf32> to vector<8x32xf32>
    %90 = arith.addf %88, %89 : vector<8x32xf32>
    %91 = arith.mulf %12, %90 : vector<8x32xf32>
    %cst_23 = arith.constant 1.000000e+00 : f32
    %92 = vector.broadcast %cst_23 : f32 to vector<8x32xf32>
    %93 = arith.subf %92, %12 : vector<8x32xf32>
    %94 = arith.mulf %93, %1 : vector<8x32xf32>
    %95 = arith.addf %91, %94 : vector<8x32xf32>
    %c0_24 = arith.constant 0 : index
    %c0_25 = arith.constant 0 : index
    %96 = vector.load %arg4[%c0_24, %c0_25] : memref<32x96xf32, #tpu.memory_space<vmem>>, vector<32x96xf32>
    %cst_26 = arith.constant dense<0.000000e+00> : vector<8x96xf32>
    %97 = tpu.matmul %95, %96, %cst_26 {dimension_numbers = #tpu.dot_dimension_numbers<[1], [0], [0], [1], [0, 0, 1, 1], [], []>, precision = #tpu.contract_precision<fp32>} : vector<8x32xf32>, vector<32x96xf32>, vector<8x96xf32> -> vector<8x96xf32>
    %98 = vector.extract_strided_slice %97 {offsets = [0, 0], sizes = [8, 64], strides = [1, 1]} : vector<8x96xf32> to vector<8x64xf32>
    %c4 = arith.constant 4 : index
    %c0_27 = arith.constant 0 : index
    %99 = vector.load %arg6[%c4, %c0_27] : memref<9x128xf32, #tpu.memory_space<vmem>>, vector<1x64xf32>
    %100 = vector.broadcast %99 : vector<1x64xf32> to vector<8x64xf32>
    %101 = arith.addf %98, %100 : vector<8x64xf32>
    %cst_28 = arith.constant 0.000000e+00 : f32
    %102 = vector.broadcast %cst_28 : f32 to vector<8x64xf32>
    %103 = arith.maximumf %101, %102 : vector<8x64xf32>
    %104 = vector.extract_strided_slice %97 {offsets = [0, 64], sizes = [8, 32], strides = [1, 1]} : vector<8x96xf32> to vector<8x32xf32>
    %c5 = arith.constant 5 : index
    %c0_29 = arith.constant 0 : index
    %105 = vector.load %arg6[%c5, %c0_29] : memref<9x128xf32, #tpu.memory_space<vmem>>, vector<1x32xf32>
    %106 = vector.broadcast %105 : vector<1x32xf32> to vector<8x32xf32>
    %107 = arith.addf %104, %106 : vector<8x32xf32>
    %108 = arith.negf %107 : vector<8x32xf32>
    %109 = math.exp %108 : vector<8x32xf32>
    %cst_30 = arith.constant 1.000000e+00 : f32
    %110 = vector.broadcast %cst_30 : f32 to vector<8x32xf32>
    %111 = arith.addf %110, %109 : vector<8x32xf32>
    %112 = arith.divf %110, %111 : vector<8x32xf32>
    %c0_31 = arith.constant 0 : index
    %c0_32 = arith.constant 0 : index
    %113 = vector.load %arg5[%c0_31, %c0_32] : memref<64x32xf32, #tpu.memory_space<vmem>>, vector<64x32xf32>
    %cst_33 = arith.constant dense<0.000000e+00> : vector<8x32xf32>
    %114 = tpu.matmul %103, %113, %cst_33 {dimension_numbers = #tpu.dot_dimension_numbers<[1], [0], [0], [1], [0, 0, 1, 1], [], []>, precision = #tpu.contract_precision<fp32>} : vector<8x64xf32>, vector<64x32xf32>, vector<8x32xf32> -> vector<8x32xf32>
    %c6 = arith.constant 6 : index
    %c0_34 = arith.constant 0 : index
    %115 = vector.load %arg6[%c6, %c0_34] : memref<9x128xf32, #tpu.memory_space<vmem>>, vector<1x32xf32>
    %116 = vector.broadcast %115 : vector<1x32xf32> to vector<8x32xf32>
    %117 = arith.addf %114, %116 : vector<8x32xf32>
    %c7 = arith.constant 7 : index
    %c0_35 = arith.constant 0 : index
    %118 = vector.load %arg6[%c7, %c0_35] : memref<9x128xf32, #tpu.memory_space<vmem>>, vector<1x32xf32>
    %c8 = arith.constant 8 : index
    %c0_36 = arith.constant 0 : index
    %119 = vector.load %arg6[%c8, %c0_36] : memref<9x128xf32, #tpu.memory_space<vmem>>, vector<1x32xf32>
    %cst_37 = arith.constant dense<0.000000e+00> : vector<8xf32>
    %120 = vector.multi_reduction <add>, %117, %cst_37 [1] : vector<8x32xf32> to vector<8xf32>
    %121 = vector.shape_cast %120 : vector<8xf32> to vector<8x1xf32>
    %cst_38 = arith.constant 3.200000e+01 : f32
    %122 = vector.broadcast %cst_38 : f32 to vector<8x1xf32>
    %123 = arith.divf %121, %122 : vector<8x1xf32>
    %124 = vector.broadcast %123 : vector<8x1xf32> to vector<8x32xf32>
    %125 = arith.subf %117, %124 : vector<8x32xf32>
    %126 = arith.mulf %125, %125 : vector<8x32xf32>
    %cst_39 = arith.constant dense<0.000000e+00> : vector<8xf32>
    %127 = vector.multi_reduction <add>, %126, %cst_39 [1] : vector<8x32xf32> to vector<8xf32>
    %128 = vector.shape_cast %127 : vector<8xf32> to vector<8x1xf32>
    %cst_40 = arith.constant 3.200000e+01 : f32
    %129 = vector.broadcast %cst_40 : f32 to vector<8x1xf32>
    %130 = arith.divf %128, %129 : vector<8x1xf32>
    %131 = vector.broadcast %123 : vector<8x1xf32> to vector<8x32xf32>
    %132 = arith.subf %117, %131 : vector<8x32xf32>
    %cst_41 = arith.constant 9.99999974E-6 : f32
    %133 = vector.broadcast %cst_41 : f32 to vector<8x1xf32>
    %134 = arith.addf %130, %133 : vector<8x1xf32>
    %135 = math.rsqrt %134 : vector<8x1xf32>
    %136 = vector.broadcast %135 : vector<8x1xf32> to vector<8x32xf32>
    %137 = arith.mulf %132, %136 : vector<8x32xf32>
    %138 = vector.broadcast %118 : vector<1x32xf32> to vector<8x32xf32>
    %139 = arith.mulf %137, %138 : vector<8x32xf32>
    %140 = vector.broadcast %119 : vector<1x32xf32> to vector<8x32xf32>
    %141 = arith.addf %139, %140 : vector<8x32xf32>
    %142 = arith.mulf %112, %141 : vector<8x32xf32>
    %cst_42 = arith.constant 1.000000e+00 : f32
    %143 = vector.broadcast %cst_42 : f32 to vector<8x32xf32>
    %144 = arith.subf %143, %112 : vector<8x32xf32>
    %145 = arith.mulf %144, %95 : vector<8x32xf32>
    %146 = arith.addf %142, %145 : vector<8x32xf32>
    %c0_43 = arith.constant 0 : index
    %c0_44 = arith.constant 0 : index
    %c0_45 = arith.constant 0 : index
    %147 = vector.load %arg7[%c0_43, %c0_44, %c0_45] : memref<1x8x32xf32, #tpu.memory_space<vmem>>, vector<1x8x32xf32>
    %148 = vector.shape_cast %147 : vector<1x8x32xf32> to vector<8x32xf32>
    %149 = vector.shape_cast %146 : vector<8x32xf32> to vector<1x8x32xf32>
    tpu.vector_store %arg7[%c0_43, %c0_44, %c0_45], %149 {strides = array<i32>} : memref<1x8x32xf32, #tpu.memory_space<vmem>>, vector<1x8x32xf32>,
    return
  }
  func.func @transform_0(%arg0: i32) -> (i32, i32, i32) {
    %c0_i32 = arith.constant 0 : i32
    %c0_i32_0 = arith.constant 0 : i32
    %c0_i32_1 = arith.constant 0 : i32
    return %arg0, %c0_i32, %c0_i32_0 : i32, i32, i32
  }
  func.func @transform_1(%arg0: i32) -> (i32, i32) {
    %c0_i32 = arith.constant 0 : i32
    %c0_i32_0 = arith.constant 0 : i32
    %c0_i32_1 = arith.constant 0 : i32
    return %c0_i32, %c0_i32_0 : i32, i32
  }
  func.func @transform_2(%arg0: i32) -> (i32, i32) {
    %c0_i32 = arith.constant 0 : i32
    %c0_i32_0 = arith.constant 0 : i32
    %c0_i32_1 = arith.constant 0 : i32
    return %c0_i32, %c0_i32_0 : i32, i32
  }
  func.func @transform_3(%arg0: i32) -> (i32, i32) {
    %c0_i32 = arith.constant 0 : i32
    %c0_i32_0 = arith.constant 0 : i32
    %c0_i32_1 = arith.constant 0 : i32
    return %c0_i32, %c0_i32_0 : i32, i32
  }
  func.func @transform_4(%arg0: i32) -> (i32, i32) {
    %c0_i32 = arith.constant 0 : i32
    %c0_i32_0 = arith.constant 0 : i32
    %c0_i32_1 = arith.constant 0 : i32
    return %c0_i32, %c0_i32_0 : i32, i32
  }
  func.func @transform_5(%arg0: i32) -> (i32, i32) {
    %c0_i32 = arith.constant 0 : i32
    %c0_i32_0 = arith.constant 0 : i32
    %c0_i32_1 = arith.constant 0 : i32
    return %c0_i32, %c0_i32_0 : i32, i32
  }
  func.func @transform_6(%arg0: i32) -> (i32, i32, i32) {
    %c0_i32 = arith.constant 0 : i32
    %c0_i32_0 = arith.constant 0 : i32
    %c0_i32_1 = arith.constant 0 : i32
    return %arg0, %c0_i32, %c0_i32_0 : i32, i32, i32
  }
}

</mosaic_0001>

<bundles_post_ra>
// kernel: transformer_encoder_layer.1
= control target key start
LH: loop header
LB: loop body
LE: loop exit
PB: predicated region body
PF: predicated region fallthrough
CT: control target
= control target key end

     0   :  { %11 = vsyncpa [#allocation3], 0  ;;  %s3162_s0 = inlined_call_operand.vmem [shape: f32[2,8,32], index: 0, kind: input, shape index: {}]   ;;  %s3163_s1 = inlined_call_operand.vmem [shape: f32[32,128], index: 1, kind: input, shape index: {}]   ;;  %s3164_s2 = inlined_call_operand.vmem [shape: f32[32,32], index: 2, kind: input, shape index: {}]   ;;  %s3165_s3 = inlined_call_operand.vmem [shape: f32[32,96], index: 3, kind: input, shape index: {}]   ;;  %s3166_s4 = inlined_call_operand.vmem [shape: f32[64,32], index: 4, kind: input, shape index: {}]   ;;  %s3167_s5 = inlined_call_operand.vmem [shape: f32[9,128], index: 5, kind: input, shape index: {}]   ;;  %s3168_s6 = inlined_call_operand.hbm [shape: f32[2,8,32], index: 6, kind: output, shape index: {}]  }
   0x1   :  { %13 = vsyncpa [#allocation3 + $0x1], 0  ;;  %s2847_s21 = smov 0   ;;  %s2849_s22 = smov 0  }
   0x2   :  { %s2851_s23 = smov 0   ;;  %s2853_s24 = smov 0  }
   0x3 LB: > { %s2868_s25 = sadd.s32 4294967295, %s2800_s24   ;;  %s2637_s26 = sadd.s32 4294967294, %s2800_s24   ;;  %s2800_s24 = sphi %s2853_s24, %s3174_s24   ;;  %s2796_s23 = sphi %s2851_s23, %s3173_s23   ;;  %s2792_s22 = sphi %s2849_s22, %s3172_s22   ;;  %s2788_s21 = sphi %s2847_s21, %s3171_s21  }
   0x4   : > { %s2872_s27 = sadd.s32 1, %s2800_s24   ;;  %s157_s28 = sadd.s32 1, %s2796_s23 }
   0x5   : > { %s154_s29 = ssub.s32 %s2800_s24, %s2872_s27  ;;  %p167_p0 = scmp.ne.s32.totalorder %s2796_s23, %s2792_s22 }
   0x6   : > { %p155_p1 = scmp.eq.s32.totalorder %s154_s29, 0  ;;  %p168_p2 = scmp.eq.s32.totalorder %s2868_s25, 1 }
   0x7   : > { %p173_p3 = scmp.ne.s32.totalorder %s2792_s22, %s2788_s21  ;;  %p174_p4 = scmp.eq.s32.totalorder %s2637_s26, 1 }
   0x8   : > { %s2883_s30 = scalar_select %p155_p1, %s2796_s23, %s157_s28  }
   0x9   : > { %p2885_p5 = por %p168_p2, %p167_p0  ;;  %p2889_p6 = por %p174_p4, %p173_p3 }
   0xa   : > { %p2640_p7 = scmp.ge.s32.totalorder %s2800_s24, 1  ;;  %p214_p8 = scmp.lt.s32.totalorder %s2800_s24, 3 }
   0xc   : > { %p215_p9 = pnand %p2640_p7, %p214_p8 }
   0xd   : > { %p243_p10 = scmp.lt.s32.totalorder (!%p215_p9), %s2868_s25, 1  ;;  %s2802_s9 = smov (!%p215_p9), 96  }
   0xe   : > { %218 = sbr.rel (%p215_p9) target bundleno = 2568 (0xa08), region = 44  ;;  %s2803_s10 = smov (!%p215_p9), 120  }
   0xf   : > { %s2804_s11 = smov (!%p215_p9), 104   ;;  %s2805_s12 = smov (!%p215_p9), 112  }
  0x10   : > { %s2806_s13 = smov (!%p215_p9), 64   ;;  %s2807_s14 = smov (!%p215_p9), 8  }
  0x11   : > { %s2808_s15 = smov (!%p215_p9), 16   ;;  %s2809_s16 = smov (!%p215_p9), 24  }
  0x13   : > { %v251_v0 = vld [vmem:[%s3163_s1 + $0x18] sm:$0xff]  ;;  %v250_v1 = vld [vmem:[%s3163_s1 + $0x10] sm:$0xff]  ;;  %v249_v2 = vld [vmem:[%s3163_s1 + $0x8] sm:$0xff]  ;;  %s244_s17 = scalar_select %p243_p10, %s2868_s25, 1  ;;  %vm254_vm0 = vcmask 261120   ;;  %vm471_vm1 = vcmask 64512  }
  0x14   : > { %v270_v3 = vand.u32 4294901760, %v251_v0  ;;  %v272_v4 = vand.u32 4294901760, %v250_v1  ;;  %v274_v5 = vand.u32 4294901760, %v249_v2  ;;  %v248_v6 = vld [vmem:[%s3163_s1] sm:$0xff] }
  0x15   : > { %v276_v7 = vand.u32 4294901760, %v248_v6  ;;  %s2642_s18 = sshll.u32 %s244_s17, 3  ;;  %v2698_v31 = vld [vmem:[%s3167_s5] ss:$0 sm:$0xff] }
  0x16   : > { %v300_v8 = vsub.f32 %v251_v0, %v270_v3  ;;  %271 = vmatpush.msra.mxu0 %v270_v3  ;;  %v306_v9 = vsub.f32 %v250_v1, %v272_v4  ;;  %371 = vmatpush.msra.mxu3 %v270_v3  ;;  %v312_v10 = vsub.f32 %v249_v2, %v274_v5  ;;  %s2912_s26 = scalar_lea.vmem %s3162_s0, %s2642_s18 }
  0x17   : > { %v318_v11 = vsub.f32 %v248_v6, %v276_v7  ;;  %v247_v15 = vld [vmem:[%s2912_s26] sm:$0xff] }
  0x18   : > { %342 = vmatpush.msra.mxu2 %v300_v8  ;;  %273 = vmatpush.msra.mxu0 %v272_v4  ;;  %v301_v12 = vand.u32 4294901760, %v300_v8  ;;  %v307_v13 = vand.u32 4294901760, %v306_v9  ;;  %v313_v14 = vand.u32 4294901760, %v312_v10  ;;  %v256_v19 = vsel %vm254_vm0, %v247_v15, 0 }
  0x19   : > { %373 = vmatpush.msra.mxu3 %v272_v4  ;;  %v319_v16 = vand.u32 4294901760, %v318_v11  ;;  %v278_v21 = vand.u32 4294901760, %v256_v19 }
  0x1a   : > { %345 = vmatpush.msra.mxu2 %v306_v9  ;;  %v302_v17 = vsub.f32 %v300_v8, %v301_v12  ;;  %275 = vmatpush.msra.mxu0 %v274_v5  ;;  %v308_v18 = vsub.f32 %v306_v9, %v307_v13  ;;  %v314_v20 = vsub.f32 %v312_v10, %v313_v14 }
  0x1b   : > { %375 = vmatpush.msra.mxu3 %v274_v5  ;;  %v320_v24 = vsub.f32 %v318_v11, %v319_v16  ;;  %v279_v25 = vsub.f32 %v256_v19, %v278_v21 }
  0x1c   : > { %v303_v22 = vand.u32 4294901760, %v302_v17  ;;  %348 = vmatpush.msra.mxu2 %v312_v10  ;;  %v309_v23 = vand.u32 4294901760, %v308_v18  ;;  %277 = vmatpush.msra.mxu0 %v276_v7  ;;  %v315_v26 = vand.u32 4294901760, %v314_v20 }
  0x1d   : > { %377 = vmatpush.msra.mxu3 %v276_v7  ;;  %v280_v27 = vand.u32 4294901760, %v279_v25  ;;  %v321_v28 = vand.u32 4294901760, %v320_v24 }
  0x1e   : > { %400 = vmatpush.msrb.mxu0 %v301_v12  ;;  %304 = vmatpush.msra.mxu1 %v303_v22 }
  0x1f   : > { %351 = vmatpush.msra.mxu2 %v318_v11  ;;  %v281_v29 = vsub.f32 %v279_v25, %v280_v27  ;;  %381 = vmatmul.f32.vlgmr.msra.gmra.mxu3 %v280_v27 }
  0x20   : > { %354 = vmatmul.f32.vlgmr.msra.gmra.mxu2 %v279_v25  ;;  %404 = vmatpush.msrb.mxu0 %v307_v13 }
  0x21   : > { %310 = vmatpush.msra.mxu1 %v309_v23  ;;  %v282_v30 = vand.u32 4294901760, %v281_v29 }
  0x22   : > { %408 = vmatpush.msrb.mxu0 %v313_v14 }
  0x23   : > { %316 = vmatpush.msra.mxu1 %v315_v26  ;;  %283 = vmatmul.f32.vlgmr.msra.gmra.mxu0 %v282_v30 }
  0x24   : > { %412 = vmatpush.msrb.mxu0 %v319_v16 }
  0x25   : > { %322 = vmatpush.msra.mxu1 %v321_v28 }
  0x26   : > { %324 = vmatmul.f32.vlgmr.msra.gmra.mxu1 %v278_v21 }
  0x27   : > { %431 = vmatpush.msrb.mxu1 %v270_v3 }
  0x29   : > { %433 = vmatpush.msrb.mxu1 %v272_v4 }
  0x2b   : > { %435 = vmatpush.msrb.mxu1 %v274_v5  ;;  %414 = vmatmul.f32.vlgmr.msrb.gmra.mxu0 %v278_v21 }
  0x2d   : > { %437 = vmatpush.msrb.mxu1 %v276_v7 }
  0x2e   : > { %439 = vmatmul.f32.vlgmr.msrb.gmra.mxu1 %v278_v21 }
  0xa0   : > { %v284_v32 = vpop.f32.mrf.mxu0 }
  0xa1   : > { %v285_v34 = vadd.f32 %v2698_v31, %v284_v32 }
  0xa2   : > { %v382_v37 = vpop.f32.mrf.mxu3 }
  0xa3   : > { %v325_v33 = vpop.f32.mrf.mxu1  ;;  %v355_v35 = vpop.f32.mrf.mxu2 }
  0xa4   : > { %v326_v36 = vadd.f32 %v325_v33, %v285_v34 }
  0xa6   : > { %v356_v38 = vadd.f32 %v355_v35, %v326_v36 }
  0xa8   : > { %v383_v39 = vadd.f32 %v382_v37, %v356_v38  ;;  %v415_v40 = vpop.f32.mrf.mxu0 }
  0xaa   : > { %v416_v42 = vadd.f32 %v415_v40, %v383_v39 }
  0xab   : > { %v440_v41 = vpop.f32.mrf.mxu1 }
  0xac   : > { %v2919_v43 = vadd.f32 %v440_v41, %v416_v42 }
  0xae   : > { %469 = vrot.lane.b32.xlu1 %v2919_v43, %s2802_s9  ;;  %463 = vrot.lane.b32.xlu0 %v2919_v43, %s2803_s10  ;;  %v472_v44 = vsel %vm471_vm1, %v2919_v43, 0  ;;  %s2758_s10 = scalar_lea.hbm %s3168_s6, 16 }
  0xaf   : > { %v493_v45 = vand.u32 4294901760, %v472_v44 }
  0xb1   : > { %v494_v46 = vsub.f32 %v472_v44, %v493_v45 }
  0xb3   : > { %v495_v47 = vand.u32 4294901760, %v494_v46 }
  0xb5   : > { %v496_v51 = vsub.f32 %v494_v46, %v495_v47 }
  0xb6   : > { %467 = vrot.lane.b32.xlu1 %v2919_v43, %s2804_s11  ;;  %465 = vrot.lane.b32.xlu0 %v2919_v43, %s2805_s12 }
  0xb7   : > { %v497_v54 = vand.u32 4294901760, %v496_v51 }
 0x120   : > { %v470_v48 = vpop.permute.xlu1 %469  ;;  %v2928_v49 = vpop.permute.xlu0 %463 }
 0x121   : > { %v474_v50 = vsel %vm471_vm1, %v470_v48, 0  ;;  %622 = vrot.lane.b32.xlu2 %v2928_v49, %s2802_s9  ;;  %v624_v60 = vsel %vm471_vm1, %v2928_v49, 0 }
 0x122   : > { %v491_v52 = vand.u32 4294901760, %v474_v50  ;;  %v645_v61 = vand.u32 4294901760, %v624_v60 }
 0x124   : > { %v518_v53 = vsub.f32 %v474_v50, %v491_v52  ;;  %492 = vmatpush.xpose.msrb.mxu2 %v491_v52  ;;  %568 = vmatpush.xpose.msra.mxu1 %v491_v52  ;;  %v646_v62 = vsub.f32 %v624_v60, %v645_v61 }
 0x126   : > { %v519_v55 = vand.u32 4294901760, %v518_v53  ;;  %545 = vmatpush.xpose.msra.mxu0 %v518_v53  ;;  %v647_v0 = vand.u32 4294901760, %v646_v62 }
 0x127   : > { %498 = vmatmul.f32.vlgmr.msrb.gmra.mxu2 %v497_v54  ;;  %572 = vmatmul.f32.vlgmr.msra.gmra.mxu1 %v495_v47 }
 0x128   : > { %594 = vmatpush.xpose.msra.mxu2 %v519_v55  ;;  %v2933_v56 = vpop.permute.xlu1 %467  ;;  %v2935_v57 = vpop.permute.xlu0 %465  ;;  %v520_v58 = vsub.f32 %v518_v53, %v519_v55  ;;  %v648_v4 = vsub.f32 %v646_v62, %v647_v0 }
 0x129   : > { %926 = vrot.lane.b32.xlu0 %v2933_v56, %s2802_s9  ;;  %774 = vrot.lane.b32.xlu2 %v2935_v57, %s2802_s9  ;;  %v776_v63 = vsel %vm471_vm1, %v2935_v57, 0  ;;  %v928_v21 = vsel %vm471_vm1, %v2933_v56, 0 }
 0x12a   : > { %548 = vmatmul.f32.vlgmr.msra.gmra.mxu0 %v494_v46  ;;  %v521_v59 = vand.u32 4294901760, %v520_v58  ;;  %v797_v1 = vand.u32 4294901760, %v776_v63  ;;  %v649_v8 = vand.u32 4294901760, %v648_v4  ;;  %v949_v23 = vand.u32 4294901760, %v928_v21 }
 0x12c   : > { %522 = vmatpush.xpose.msrb.mxu3 %v521_v59  ;;  %v798_v6 = vsub.f32 %v776_v63, %v797_v1  ;;  %v950_v24 = vsub.f32 %v928_v21, %v949_v23 }
 0x12e   : > { %v799_v10 = vand.u32 4294901760, %v798_v6  ;;  %v951_v25 = vand.u32 4294901760, %v950_v24 }
 0x12f   : > { %524 = vmatmul.f32.vlgmr.msrb.gmra.mxu3 %v493_v45  ;;  %596 = vmatmul.f32.vlgmr.msra.gmra.mxu2 %v493_v45 }
 0x130   : > { %616 = vmatpush.xpose.msra.mxu3 %v491_v52  ;;  %v800_v16 = vsub.f32 %v798_v6, %v799_v10  ;;  %v952_v28 = vsub.f32 %v950_v24, %v951_v25 }
 0x132   : > { %v801_v19 = vand.u32 4294901760, %v800_v16  ;;  %v953_v31 = vand.u32 4294901760, %v952_v28 }
 0x137   : > { %618 = vmatmul.f32.vlgmr.msra.gmra.mxu3 %v493_v45 }
 0x17b   : > { %v623_v2 = vpop.permute.xlu2 %622 }
 0x17c   : > { %v626_v3 = vsel %vm471_vm1, %v623_v2, 0 }
 0x17d   : > { %v643_v5 = vand.u32 4294901760, %v626_v3 }
 0x17f   : > { %v670_v7 = vsub.f32 %v626_v3, %v643_v5  ;;  %644 = vmatpush.xpose.msrb.mxu0 %v643_v5  ;;  %720 = vmatpush.xpose.msrb.mxu3 %v643_v5 }
 0x181   : > { %v671_v9 = vand.u32 4294901760, %v670_v7  ;;  %697 = vmatpush.xpose.msrb.mxu2 %v670_v7 }
 0x182   : > { %650 = vmatmul.f32.vlgmr.msrb.gmra.mxu0 %v649_v8  ;;  %724 = vmatmul.f32.vlgmr.msrb.gmra.mxu3 %v647_v0 }
 0x183   : > { %v672_v11 = vsub.f32 %v670_v7, %v671_v9  ;;  %v775_v12 = vpop.permute.xlu2 %774  ;;  %746 = vmatpush.xpose.msra.mxu0 %v671_v9 }
 0x184   : > { %v778_v13 = vsel %vm471_vm1, %v775_v12, 0  ;;  %700 = vmatmul.f32.vlgmr.msrb.gmra.mxu2 %v646_v62 }
 0x185   : > { %v673_v14 = vand.u32 4294901760, %v672_v11  ;;  %v795_v15 = vand.u32 4294901760, %v778_v13 }
 0x187   : > { %v822_v17 = vsub.f32 %v778_v13, %v795_v15  ;;  %674 = vmatpush.xpose.msrb.mxu1 %v673_v14  ;;  %796 = vmatpush.xpose.msra.mxu2 %v795_v15 }
 0x189   : > { %v823_v18 = vand.u32 4294901760, %v822_v17  ;;  %849 = vmatpush.xpose.msrb.mxu0 %v822_v17 }
 0x18a   : > { %676 = vmatmul.f32.vlgmr.msrb.gmra.mxu1 %v645_v61  ;;  %748 = vmatmul.f32.vlgmr.msra.gmra.mxu0 %v645_v61 }
 0x18b   : > { %768 = vmatpush.xpose.msra.mxu1 %v643_v5  ;;  %v824_v20 = vsub.f32 %v822_v17, %v823_v18  ;;  %898 = vmatpush.xpose.msrb.mxu2 %v823_v18 }
 0x18c   : > { %802 = vmatmul.f32.vlgmr.msra.gmra.mxu2 %v801_v19 }
 0x18d   : > { %v825_v22 = vand.u32 4294901760, %v824_v20 }
 0x18f   : > { %872 = vmatpush.xpose.msrb.mxu1 %v795_v15  ;;  %826 = vmatpush.xpose.msra.mxu3 %v825_v22 }
 0x192   : > { %770 = vmatmul.f32.vlgmr.msra.gmra.mxu1 %v645_v61  ;;  %828 = vmatmul.f32.vlgmr.msra.gmra.mxu3 %v797_v1 }
 0x193   : > { %920 = vmatpush.xpose.msrb.mxu3 %v795_v15  ;;  %852 = vmatmul.f32.vlgmr.msrb.gmra.mxu0 %v798_v6 }
 0x194   : > { %900 = vmatmul.f32.vlgmr.msrb.gmra.mxu2 %v797_v1 }
 0x19a   : > { %876 = vmatmul.f32.vlgmr.msrb.gmra.mxu1 %v799_v10  ;;  %922 = vmatmul.f32.vlgmr.msrb.gmra.mxu3 %v797_v1 }
 0x19b   : > { %v927_v26 = vpop.permute.xlu0 %926 }
 0x19c   : > { %v930_v27 = vsel %vm471_vm1, %v927_v26, 0 }
 0x19d   : > { %v947_v29 = vand.u32 4294901760, %v930_v27 }
 0x19f   : > { %v974_v30 = vsub.f32 %v930_v27, %v947_v29  ;;  %948 = vmatpush.xpose.msra.mxu0 %v947_v29  ;;  %1024 = vmatpush.xpose.msra.mxu3 %v947_v29 }
 0x1a1   : > { %v975_v32 = vand.u32 4294901760, %v974_v30  ;;  %1001 = vmatpush.xpose.msra.mxu2 %v974_v30 }
 0x1a2   : > { %954 = vmatmul.f32.vlgmr.msra.gmra.mxu0 %v953_v31  ;;  %1028 = vmatmul.f32.vlgmr.msra.gmra.mxu3 %v951_v25 }
 0x1a3   : > { %v976_v33 = vsub.f32 %v974_v30, %v975_v32  ;;  %1050 = vmatpush.xpose.msrb.mxu0 %v975_v32 }
 0x1a4   : > { %1004 = vmatmul.f32.vlgmr.msra.gmra.mxu2 %v950_v24  ;;  %v573_v40 = vpop.f32.mrf.mxu1 }
 0x1a5   : > { %v977_v34 = vand.u32 4294901760, %v976_v33 }
 0x1a7   : > { %978 = vmatpush.xpose.msra.mxu1 %v977_v34  ;;  %v549_v38 = vpop.f32.mrf.mxu0 }
 0x1aa   : > { %980 = vmatmul.f32.vlgmr.msra.gmra.mxu1 %v949_v23  ;;  %1052 = vmatmul.f32.vlgmr.msrb.gmra.mxu0 %v949_v23  ;;  %v499_v35 = vpop.f32.mrf.mxu2 }
 0x1ab   : > { %1072 = vmatpush.xpose.msrb.mxu1 %v947_v29 }
 0x1b2   : > { %v525_v36 = vpop.f32.mrf.mxu3  ;;  %1074 = vmatmul.f32.vlgmr.msrb.gmra.mxu1 %v949_v23  ;;  %v597_v42 = vpop.f32.mrf.mxu2 }
 0x1b3   : > { %v526_v37 = vadd.f32 %v525_v36, %v499_v35 }
 0x1b5   : > { %v550_v39 = vadd.f32 %v549_v38, %v526_v37 }
 0x1b7   : > { %v574_v41 = vadd.f32 %v573_v40, %v550_v39 }
 0x1b9   : > { %v598_v44 = vadd.f32 %v597_v42, %v574_v41 }
 0x1ba   : > { %v619_v45 = vpop.f32.mrf.mxu3 }
 0x1bb   : > { %v620_v46 = vadd.f32 %v619_v45, %v598_v44 }
 0x1bd   : > { %v1078_v47 = vmul.f32 0.35355338, %v620_v46 }
 0x1bf   : > { %v1082_v48 = vsel %vm471_vm1, %v1078_v47, -inf }
 0x1c0   : > { %1083 = vmax.xlane.f32.xlu1 %v1082_v48 }
 0x1ff   : > { %v651_v50 = vpop.f32.mrf.mxu0 }
 0x205   : > { %v725_v55 = vpop.f32.mrf.mxu3 }
 0x207   : > { %v677_v51 = vpop.f32.mrf.mxu1  ;;  %v701_v52 = vpop.f32.mrf.mxu2 }
 0x208   : > { %v678_v53 = vadd.f32 %v677_v51, %v651_v50  ;;  %v749_v59 = vpop.f32.mrf.mxu0 }
 0x20a   : > { %v702_v54 = vadd.f32 %v701_v52, %v678_v53 }
 0x20c   : > { %v726_v58 = vadd.f32 %v725_v55, %v702_v54 }
 0x20e   : > { %v750_v60 = vadd.f32 %v749_v59, %v726_v58 }
 0x20f   : > { %v771_v61 = vpop.f32.mrf.mxu1  ;;  %v803_v63 = vpop.f32.mrf.mxu2 }
 0x210   : > { %v772_v62 = vadd.f32 %v771_v61, %v750_v60  ;;  %v853_v4 = vpop.f32.mrf.mxu0 }
 0x212   : > { %v1079_v0 = vmul.f32 0.35355338, %v772_v62 }
 0x214   : > { %v1085_v1 = vsel %vm471_vm1, %v1079_v0, -inf }
 0x215   : > { %v829_v2 = vpop.f32.mrf.mxu3  ;;  %1086 = vmax.xlane.f32.xlu2 %v1085_v1 }
 0x216   : > { %v830_v3 = vadd.f32 %v829_v2, %v803_v63 }
 0x217   : > { %v877_v6 = vpop.f32.mrf.mxu1  ;;  %v901_v8 = vpop.f32.mrf.mxu2 }
 0x218   : > { %v854_v5 = vadd.f32 %v853_v4, %v830_v3 }
 0x21a   : > { %v878_v7 = vadd.f32 %v877_v6, %v854_v5 }
 0x21c   : > { %v902_v9 = vadd.f32 %v901_v8, %v878_v7 }
 0x21d   : > { %v923_v10 = vpop.f32.mrf.mxu3 }
 0x21e   : > { %v924_v11 = vadd.f32 %v923_v10, %v902_v9 }
 0x21f   : > { %v955_v14 = vpop.f32.mrf.mxu0 }
 0x220   : > { %v1080_v12 = vmul.f32 0.35355338, %v924_v11 }
 0x222   : > { %v1088_v13 = vsel %vm471_vm1, %v1080_v12, -inf }
 0x223   : > { %1089 = vmax.xlane.f32.xlu0 %v1088_v13 }
 0x225   : > { %v1029_v19 = vpop.f32.mrf.mxu3 }
 0x227   : > { %v981_v15 = vpop.f32.mrf.mxu1  ;;  %v1005_v17 = vpop.f32.mrf.mxu2 }
 0x228   : > { %v982_v16 = vadd.f32 %v981_v15, %v955_v14  ;;  %v1053_v21 = vpop.f32.mrf.mxu0 }
 0x22a   : > { %v1006_v18 = vadd.f32 %v1005_v17, %v982_v16 }
 0x22c   : > { %v1030_v20 = vadd.f32 %v1029_v19, %v1006_v18 }
 0x22e   : > { %v1054_v22 = vadd.f32 %v1053_v21, %v1030_v20 }
 0x22f   : > { %v1075_v23 = vpop.f32.mrf.mxu1 }
 0x230   : > { %v1076_v24 = vadd.f32 %v1075_v23, %v1054_v22 }
 0x232   : > { %v1081_v25 = vmul.f32 0.35355338, %v1076_v24 }
 0x233   : > { %v1084_v26 = vpop.xlane.xlu1 %1083 }
 0x234   : > { %v1094_v27 = vsub.f32 %v1078_v47, %v1084_v26  ;;  %v1091_v28 = vsel %vm471_vm1, %v1081_v25, -inf }
 0x235   : > { %1092 = vmax.xlane.f32.xlu2 %v1091_v28 }
 0x236   : > { %v1098_v29 = vmul.f32 1.442695, %v1094_v27 }
 0x237   : > { %1178 = vrot.lane.b32.xlu0 %v2919_v43, %s2806_s13 }
 0x238   : > { %2707 = vpow2.f32 %v1098_v29 }
 0x23e   : > { %v2708_v30 = vpop.eup %2707 }
 0x23f   : > { %1634 = vrot.lane.b32.xlu0 %v2933_v56, %s2806_s13  ;;  %v1106_v31 = vsel %vm471_vm1, %v2708_v30, 0.0 }
 0x240   : > { %1107 = vadd.xlane.f32.xlu1 %v1106_v31 }
 0x288   : > { %v1087_v32 = vpop.xlane.xlu2 %1086 }
 0x289   : > { %v1095_v33 = vsub.f32 %v1079_v0, %v1087_v32 }
 0x28b   : > { %v1100_v34 = vmul.f32 1.442695, %v1095_v33 }
 0x28d   : > { %2709 = vpow2.f32 %v1100_v34 }
 0x293   : > { %v2959_v35 = vpop.eup %2709 }
 0x294   : > { %v1109_v36 = vsel %vm471_vm1, %v2959_v35, 0.0 }
 0x295   : > { %1110 = vadd.xlane.f32.xlu2 %v1109_v36 }
 0x296   : > { %v1090_v37 = vpop.xlane.xlu0 %1089 }
 0x297   : > { %v1096_v38 = vsub.f32 %v1080_v12, %v1090_v37 }
 0x299   : > { %v1102_v39 = vmul.f32 1.442695, %v1096_v38 }
 0x29b   : > { %2711 = vpow2.f32 %v1102_v39 }
 0x2a1   : > { %v2963_v40 = vpop.eup %2711 }
 0x2a2   : > { %v1112_v56 = vsel %vm471_vm1, %v2963_v40, 0.0 }
 0x2a3   : > { %1113 = vadd.xlane.f32.xlu1 %v1112_v56 }
 0x2a8   : > { %v1093_v41 = vpop.xlane.xlu2 %1092 }
 0x2a9   : > { %v1097_v42 = vsub.f32 %v1081_v25, %v1093_v41  ;;  %v1179_v44 = vpop.permute.xlu0 %1178 }
 0x2aa   : > { %v1199_v45 = vand.u32 4294901760, %v1179_v44 }
 0x2ab   : > { %v1104_v46 = vmul.f32 1.442695, %v1097_v42 }
 0x2ac   : > { %v1226_v47 = vsub.f32 %v1179_v44, %v1199_v45  ;;  %1200 = vmatpush.msrb.mxu2 %v1199_v45  ;;  %1276 = vmatpush.msra.mxu1 %v1199_v45 }
 0x2ad   : > { %2713 = vpow2.f32 %v1104_v46  ;;  %1330 = vrot.lane.b32.xlu2 %v2928_v49, %s2806_s13 }
 0x2ae   : > { %v1227_v48 = vand.u32 4294901760, %v1226_v47  ;;  %1253 = vmatpush.msra.mxu0 %v1226_v47 }
 0x2b0   : > { %v1228_v50 = vsub.f32 %v1226_v47, %v1227_v48  ;;  %1302 = vmatpush.msra.mxu2 %v1227_v48 }
 0x2b1   : > { %v1635_v48 = vpop.permute.xlu0 %1634 }
 0x2b2   : > { %v1229_v51 = vand.u32 4294901760, %v1228_v50 }
 0x2b3   : > { %v2969_v52 = vpop.eup %2713  ;;  %v1108_v53 = vpop.xlane.xlu1 %1107 }
 0x2b4   : > { %2715 = vrcp.f32 %v1108_v53  ;;  %1230 = vmatpush.msrb.mxu3 %v1229_v51  ;;  %v1115_v54 = vsel %vm471_vm1, %v2969_v52, 0.0  ;;  %v1129_v60 = vand.u32 2147483648, %v1108_v53  ;;  %v1127_v61 = vand.u32 2147483647, %v1108_v53 }
 0x2b5   : > { %1116 = vadd.xlane.f32.xlu1 %v1115_v54  ;;  %vm1123_vm3 = vweird.f32 %v1108_v53  ;;  %v1655_v54 = vand.u32 4294901760, %v1635_v48 }
 0x2b6   : > { %1324 = vmatpush.msra.mxu3 %v1199_v45  ;;  %v1130_v63 = vor.u32 1.1754944e-38, %v1129_v60  ;;  %vm1128_vm5 = vcmp.eq.f32.partialorder %v1127_v61, 8.507059e+37 }
 0x2b7   : > { %v1682_v61 = vsub.f32 %v1635_v48, %v1655_v54 }
 0x2ba   : > { %v2716_v55 = vpop.eup %2715 }
 0x2bb   : > { %v1119_v58 = vmul.f32 %v2716_v55, %v1108_v53  ;;  %vm1124_vm2 = vweird.f32 %v2716_v55 }
 0x2bc   : > { %vm1125_vm4 = vmor %vm1123_vm3, %vm1124_vm2 }
 0x2bd   : > { %v1120_v59 = vsub.f32 1.0, %v1119_v58 }
 0x2bf   : > { %v1121_v49 = vmul.f32 %v2716_v55, %v1120_v59 }
 0x2c1   : > { %v1122_v62 = vadd.f32 %v2716_v55, %v1121_v49 }
 0x2c3   : > { %v1126_v0 = vsel %vm1125_vm4, %v2716_v55, %v1122_v62  ;;  %vm1799_vm4 = vcmask 130048  }
 0x2c4   : > { %v1131_v1 = vsel %vm1128_vm5, %v1130_v63, %v1126_v0  ;;  %vm1801_vm5 = vcmask 195584  }
 0x2c5   : > { %v1132_v2 = vmul.f32 %v2708_v30, %v1131_v1 }
 0x2c7   : > { %v1182_v3 = vsel %vm471_vm1, %v1132_v2, 0  ;;  %v1683_v2 = vand.u32 4294901760, %v1682_v61 }
 0x2c8   : > { %v1201_v4 = vand.u32 4294901760, %v1182_v3 }
 0x2ca   : > { %1232 = vmatmul.f32.vlgmr.msrb.gmra.mxu3 %v1201_v4  ;;  %v1202_v5 = vsub.f32 %v1182_v3, %v1201_v4 }
 0x2cc   : > { %1256 = vmatmul.f32.vlgmr.msra.gmra.mxu0 %v1202_v5  ;;  %v1203_v6 = vand.u32 4294901760, %v1202_v5 }
 0x2ce   : > { %1280 = vmatmul.f32.vlgmr.msra.gmra.mxu1 %v1203_v6  ;;  %v1204_v7 = vsub.f32 %v1202_v5, %v1203_v6  ;;  %1482 = vrot.lane.b32.xlu1 %v2935_v57, %s2806_s13  ;;  %v1684_v6 = vsub.f32 %v1682_v61, %v1683_v2 }
 0x2d0   : > { %v1205_v8 = vand.u32 4294901760, %v1204_v7 }
 0x2d2   : > { %1206 = vmatmul.f32.vlgmr.msrb.gmra.mxu2 %v1205_v8  ;;  %1326 = vmatmul.f32.vlgmr.msra.gmra.mxu3 %v1201_v4 }
 0x2da   : > { %1304 = vmatmul.f32.vlgmr.msra.gmra.mxu2 %v1201_v4 }
 0x308   : > { %v1111_v9 = vpop.xlane.xlu2 %1110 }
 0x309   : > { %2717 = vrcp.f32 %v1111_v9  ;;  %v1144_v15 = vand.u32 2147483648, %v1111_v9  ;;  %v1142_v18 = vand.u32 2147483647, %v1111_v9  ;;  %vm1138_vm7 = vweird.f32 %v1111_v9 }
 0x30b   : > { %v1145_v21 = vor.u32 1.1754944e-38, %v1144_v15  ;;  %vm1143_vm9 = vcmp.eq.f32.partialorder %v1142_v18, 8.507059e+37 }
 0x30f   : > { %v2718_v10 = vpop.eup %2717 }
 0x310   : > { %v1134_v11 = vmul.f32 %v2718_v10, %v1111_v9  ;;  %v1331_v12 = vpop.permute.xlu2 %1330  ;;  %vm1139_vm6 = vweird.f32 %v2718_v10 }
 0x311   : > { %v1351_v13 = vand.u32 4294901760, %v1331_v12  ;;  %vm1140_vm8 = vmor %vm1138_vm7, %vm1139_vm6 }
 0x312   : > { %v1135_v14 = vsub.f32 1.0, %v1134_v11  ;;  %v1685_v11 = vand.u32 4294901760, %v1684_v6 }
 0x313   : > { %v1378_v16 = vsub.f32 %v1331_v12, %v1351_v13  ;;  %1352 = vmatpush.msrb.mxu0 %v1351_v13  ;;  %1428 = vmatpush.msrb.mxu3 %v1351_v13 }
 0x314   : > { %v1136_v17 = vmul.f32 %v2718_v10, %v1135_v14 }
 0x315   : > { %v1379_v19 = vand.u32 4294901760, %v1378_v16  ;;  %1405 = vmatpush.msrb.mxu2 %v1378_v16 }
 0x316   : > { %v1137_v57 = vadd.f32 %v2718_v10, %v1136_v17  ;;  %v1114_v20 = vpop.xlane.xlu1 %1113 }
 0x317   : > { %v1380_v22 = vsub.f32 %v1378_v16, %v1379_v19  ;;  %2719 = vrcp.f32 %v1114_v20  ;;  %1454 = vmatpush.msra.mxu0 %v1379_v19  ;;  %v1159_v36 = vand.u32 2147483648, %v1114_v20  ;;  %vm1153_vm11 = vweird.f32 %v1114_v20 }
 0x318   : > { %v1141_v23 = vsel %vm1140_vm8, %v2718_v10, %v1137_v57 }
 0x319   : > { %v1146_v24 = vsel %vm1143_vm9, %v1145_v21, %v1141_v23  ;;  %v1381_v25 = vand.u32 4294901760, %v1380_v22  ;;  %v1160_v41 = vor.u32 1.1754944e-38, %v1159_v36 }
 0x31a   : > { %v1147_v26 = vmul.f32 %v2959_v35, %v1146_v24  ;;  %v1157_v35 = vand.u32 2147483647, %v1114_v20 }
 0x31b   : > { %1382 = vmatpush.msrb.mxu1 %v1381_v25 }
 0x31c   : > { %v1334_v27 = vsel %vm471_vm1, %v1147_v26, 0  ;;  %vm1158_vm13 = vcmp.eq.f32.partialorder %v1157_v35, 8.507059e+37 }
 0x31d   : > { %1476 = vmatpush.msra.mxu1 %v1351_v13  ;;  %v2720_v28 = vpop.eup %2719  ;;  %v1353_v29 = vand.u32 4294901760, %v1334_v27 }
 0x31e   : > { %v1149_v30 = vmul.f32 %v2720_v28, %v1114_v20  ;;  %vm1154_vm10 = vweird.f32 %v2720_v28 }
 0x31f   : > { %1384 = vmatmul.f32.vlgmr.msrb.gmra.mxu1 %v1353_v29  ;;  %v1354_v31 = vsub.f32 %v1334_v27, %v1353_v29  ;;  %vm1155_vm12 = vmor %vm1153_vm11, %vm1154_vm10 }
 0x320   : > { %v1150_v32 = vsub.f32 1.0, %v1149_v30 }
 0x321   : > { %1408 = vmatmul.f32.vlgmr.msrb.gmra.mxu2 %v1354_v31  ;;  %v1355_v33 = vand.u32 4294901760, %v1354_v31 }
 0x322   : > { %v1151_v34 = vmul.f32 %v2720_v28, %v1150_v32 }
 0x323   : > { %1432 = vmatmul.f32.vlgmr.msrb.gmra.mxu3 %v1355_v33  ;;  %v1356_v37 = vsub.f32 %v1354_v31, %v1355_v33 }
 0x324   : > { %v1152_v38 = vadd.f32 %v2720_v28, %v1151_v34 }
 0x325   : > { %v1357_v39 = vand.u32 4294901760, %v1356_v37 }
 0x326   : > { %v1156_v56 = vsel %vm1155_vm12, %v2720_v28, %v1152_v38 }
 0x327   : > { %1358 = vmatmul.f32.vlgmr.msrb.gmra.mxu0 %v1357_v39  ;;  %1478 = vmatmul.f32.vlgmr.msra.gmra.mxu1 %v1353_v29  ;;  %v1161_v42 = vsel %vm1158_vm13, %v1160_v41, %v1156_v56  ;;  %vm2277_vm13 = vcmask 523264  }
 0x328   : > { %v1117_v44 = vpop.xlane.xlu1 %1116  ;;  %v1162_v45 = vmul.f32 %v2963_v40, %v1161_v42 }
 0x329   : > { %2721 = vrcp.f32 %v1117_v44  ;;  %v1174_v55 = vand.u32 2147483648, %v1117_v44  ;;  %v1172_v59 = vand.u32 2147483647, %v1117_v44  ;;  %vm1168_vm15 = vweird.f32 %v1117_v44 }
 0x32a   : > { %v1486_v47 = vsel %vm471_vm1, %v1162_v45, 0 }
 0x32b   : > { %v1505_v53 = vand.u32 4294901760, %v1486_v47  ;;  %v1175_v62 = vor.u32 1.1754944e-38, %v1174_v55  ;;  %vm1173_vm3 = vcmp.eq.f32.partialorder %v1172_v59, 8.507059e+37 }
 0x32d   : > { %v1506_v49 = vsub.f32 %v1486_v47, %v1505_v53 }
 0x32f   : > { %1456 = vmatmul.f32.vlgmr.msra.gmra.mxu0 %v1353_v29  ;;  %v2722_v46 = vpop.eup %2721  ;;  %v1507_v0 = vand.u32 4294901760, %v1506_v49 }
 0x330   : > { %v1164_v50 = vmul.f32 %v2722_v46, %v1117_v44  ;;  %vm1169_vm14 = vweird.f32 %v2722_v46 }
 0x331   : > { %vm1170_vm2 = vmor %vm1168_vm15, %vm1169_vm14  ;;  %v1508_v5 = vsub.f32 %v1506_v49, %v1507_v0 }
 0x332   : > { %v1165_v51 = vsub.f32 1.0, %v1164_v50 }
 0x333   : > { %v1509_v10 = vand.u32 4294901760, %v1508_v5 }
 0x334   : > { %v1166_v58 = vmul.f32 %v2722_v46, %v1165_v51 }
 0x336   : > { %v1167_v60 = vadd.f32 %v2722_v46, %v1166_v58 }
 0x338   : > { %v1171_v40 = vsel %vm1170_vm2, %v2722_v46, %v1167_v60 }
 0x339   : > { %v1176_v63 = vsel %vm1173_vm3, %v1175_v62, %v1171_v40  ;;  %v1805_v62 = vld [vmem:[%s3164_s2 + $0x10] sm:$0xff] }
 0x33a   : > { %v1177_v1 = vmul.f32 %v2969_v52, %v1176_v63  ;;  %v1826_v63 = vand.u32 4294901760, %v1805_v62 }
 0x33c   : > { %v1638_v3 = vsel %vm471_vm1, %v1177_v1, 0  ;;  %v1860_v1 = vsub.f32 %v1805_v62, %v1826_v63 }
 0x33d   : > { %v1657_v4 = vand.u32 4294901760, %v1638_v3 }
 0x33f   : > { %v1658_v8 = vsub.f32 %v1638_v3, %v1657_v4  ;;  %v1861_v3 = vand.u32 4294901760, %v1860_v1 }
 0x340   : > { %v1483_v7 = vpop.permute.xlu1 %1482 }
 0x341   : > { %v1503_v9 = vand.u32 4294901760, %v1483_v7  ;;  %v1659_v13 = vand.u32 4294901760, %v1658_v8  ;;  %v1862_v5 = vsub.f32 %v1860_v1, %v1861_v3 }
 0x343   : > { %v1530_v12 = vsub.f32 %v1483_v7, %v1503_v9  ;;  %1504 = vmatpush.msra.mxu2 %v1503_v9  ;;  %1580 = vmatpush.msrb.mxu1 %v1503_v9  ;;  %v1660_v15 = vsub.f32 %v1658_v8, %v1659_v13  ;;  %v1863_v7 = vand.u32 4294901760, %v1862_v5 }
 0x344   : > { %1510 = vmatmul.f32.vlgmr.msra.gmra.mxu2 %v1509_v10  ;;  %1584 = vmatmul.f32.vlgmr.msrb.gmra.mxu1 %v1507_v0  ;;  %v1803_v10 = vld [vmem:[%s3164_s2] sm:$0xff] }
 0x345   : > { %v1531_v14 = vand.u32 4294901760, %v1530_v12  ;;  %1686 = vmatpush.msra.mxu1 %v1685_v11  ;;  %1557 = vmatpush.msrb.mxu0 %v1530_v12  ;;  %v1661_v17 = vand.u32 4294901760, %v1660_v15 }
 0x346   : > { %1560 = vmatmul.f32.vlgmr.msrb.gmra.mxu0 %v1506_v49 }
 0x347   : > { %1780 = vmatpush.msrb.mxu1 %v1655_v54  ;;  %v1532_v52 = vsub.f32 %v1530_v12, %v1531_v14  ;;  %1656 = vmatpush.msra.mxu0 %v1655_v54  ;;  %v1830_v12 = vand.u32 4294901760, %v1803_v10 }
 0x348   : > { %1606 = vmatpush.msrb.mxu2 %v1531_v14 }
 0x349   : > { %1758 = vmatpush.msrb.mxu0 %v1683_v2  ;;  %v1533_v16 = vand.u32 4294901760, %v1532_v52  ;;  %v2984_v20 = vpop.f32.mrf.mxu0  ;;  %v1872_v14 = vsub.f32 %v1803_v10, %v1830_v12 }
 0x34a   : > { %1709 = vmatpush.msra.mxu2 %v1682_v61  ;;  %v1806_v61 = vld [vmem:[%s3164_s2 + $0x18] sm:$0xff] }
 0x34b   : > { %1534 = vmatpush.msra.mxu3 %v1533_v16  ;;  %v2986_v21 = vpop.f32.mrf.mxu1  ;;  %v1824_v40 = vand.u32 4294901760, %v1806_v61  ;;  %v1873_v15 = vand.u32 4294901760, %v1872_v14 }
 0x34c   : > { %1536 = vmatmul.f32.vlgmr.msra.gmra.mxu3 %v1505_v53  ;;  %1608 = vmatmul.f32.vlgmr.msrb.gmra.mxu2 %v1505_v53 }
 0x34d   : > { %1628 = vmatpush.msrb.mxu3 %v1503_v9  ;;  %1688 = vmatmul.f32.vlgmr.msra.gmra.mxu1 %v1657_v4  ;;  %v1233_v18 = vpop.f32.mrf.mxu3  ;;  %v1854_v0 = vsub.f32 %v1806_v61, %v1824_v40 }
 0x34e   : > { %1662 = vmatmul.f32.vlgmr.msra.gmra.mxu0 %v1661_v17  ;;  %1925 = vmatpush.msra.mxu1 %v1824_v40  ;;  %v1874_v17 = vsub.f32 %v1872_v14, %v1873_v15 }
 0x34f   : > { %1732 = vmatpush.msra.mxu3 %v1655_v54  ;;  %1825 = vmatpush.msrb.mxu2 %v1824_v40  ;;  %v1855_v2 = vand.u32 4294901760, %v1854_v0 }
 0x350   : > { %1896 = vmatpush.msra.mxu0 %v1854_v0  ;;  %1927 = vmatpush.msra.mxu1 %v1826_v63 }
 0x351   : > { %1827 = vmatpush.msrb.mxu2 %v1826_v63 }
 0x352   : > { %1899 = vmatpush.msra.mxu0 %v1860_v1 }
 0x354   : > { %1630 = vmatmul.f32.vlgmr.msrb.gmra.mxu3 %v1505_v53  ;;  %1712 = vmatmul.f32.vlgmr.msra.gmra.mxu2 %v1658_v8  ;;  %v1804_v8 = vld [vmem:[%s3164_s2 + $0x8] sm:$0xff] }
 0x355   : > { %v1207_v19 = vpop.f32.mrf.mxu2  ;;  %1782 = vmatmul.f32.vlgmr.msrb.gmra.mxu1 %v1657_v4  ;;  %v2990_v23 = vpop.f32.mrf.mxu3  ;;  %v1828_v9 = vand.u32 4294901760, %v1804_v8 }
 0x356   : > { %v2982_v57 = vadd.f32 %v1233_v18, %v1207_v19  ;;  %1760 = vmatmul.f32.vlgmr.msrb.gmra.mxu0 %v1657_v4  ;;  %v1856_v4 = vsub.f32 %v1854_v0, %v1855_v2  ;;  %v1875_v18 = vand.u32 4294901760, %v1874_v17 }
 0x357   : > { %v1866_v11 = vsub.f32 %v1804_v8, %v1828_v9  ;;  %1929 = vmatpush.msra.mxu1 %v1828_v9  ;;  %1829 = vmatpush.msrb.mxu2 %v1828_v9  ;;  %v2700_v8 = vld [vmem:[%s3167_s5 + $0x2] ss:$0 sm:$0xff] }
 0x358   : > { %v1857_v6 = vand.u32 4294901760, %v1856_v4  ;;  %v1258_v19 = vadd.f32 %v2984_v20, %v2982_v57 }
 0x359   : > { %1902 = vmatpush.msra.mxu0 %v1866_v11  ;;  %1931 = vmatpush.msra.mxu1 %v1830_v12 }
 0x35a   : > { %1858 = vmatpush.msrb.mxu3 %v1857_v6  ;;  %1831 = vmatpush.msrb.mxu2 %v1830_v12 }
 0x35b   : > { %1905 = vmatpush.msra.mxu0 %v1872_v14  ;;  %v2737_v14 = vld [vmem:[%s2912_s26] sm:$0xff]  ;;  %s2811_s26 = smov 32  }
 0x35c   : > { %1736 = vmatmul.f32.vlgmr.msra.gmra.mxu3 %v1659_v13  ;;  %v1867_v13 = vand.u32 4294901760, %v1866_v11  ;;  %1954 = vmatpush.msra.mxu2 %v1855_v2 }
 0x35d   : > { %v2988_v22 = vpop.f32.mrf.mxu2  ;;  %1864 = vmatpush.msrb.mxu3 %v1863_v7 }
 0x35e   : > { %v1868_v52 = vsub.f32 %v1866_v11, %v1867_v13  ;;  %1958 = vmatpush.msra.mxu2 %v1861_v3  ;;  %v2701_v11 = vld [vmem:[%s3167_s5 + $0x3] ss:$0 sm:$0xff] }
 0x360   : > { %v1869_v16 = vand.u32 4294901760, %v1868_v52  ;;  %1962 = vmatpush.msra.mxu2 %v1867_v13  ;;  %v2643_v52 = vmul.f32 -1.442695, %v2919_v43 }
 0x362   : > { %1870 = vmatpush.msrb.mxu3 %v1869_v16  ;;  %1966 = vmatpush.msra.mxu2 %v1873_v15  ;;  %v2702_v16 = vld [vmem:[%s3167_s5 + $0x5] ss:$0 sm:$0xff] }
 0x364   : > { %1876 = vmatpush.msrb.mxu3 %v1875_v18 }
 0x366   : > { %1985 = vmatpush.msra.mxu3 %v1824_v40 }
 0x368   : > { %1987 = vmatpush.msra.mxu3 %v1826_v63 }
 0x36a   : > { %1989 = vmatpush.msra.mxu3 %v1828_v9 }
 0x36c   : > { %1991 = vmatpush.msra.mxu3 %v1830_v12 }
 0x39c   : > { %v1385_v24 = vpop.f32.mrf.mxu1 }
 0x3a4   : > { %v1359_v25 = vpop.f32.mrf.mxu0  ;;  %v1409_v27 = vpop.f32.mrf.mxu2 }
 0x3a5   : > { %v1386_v26 = vadd.f32 %v1385_v24, %v1359_v25  ;;  %v1479_v33 = vpop.f32.mrf.mxu1  ;;  %v1282_v24 = vadd.f32 %v2986_v21, %v1258_v19 }
 0x3a6   : > { %v1433_v29 = vpop.f32.mrf.mxu3 }
 0x3a7   : > { %v1410_v28 = vadd.f32 %v1409_v27, %v1386_v26  ;;  %v1306_v26 = vadd.f32 %v2988_v22, %v1282_v24  ;;  %v2699_v22 = vld [vmem:[%s3167_s5 + $0x1] ss:$0 sm:$0xff] }
 0x3a9   : > { %v1434_v30 = vadd.f32 %v1433_v29, %v1410_v28  ;;  %v1328_v27 = vadd.f32 %v2990_v23, %v1306_v26 }
 0x3ac   : > { %v1457_v31 = vpop.f32.mrf.mxu0 }
 0x3ad   : > { %v1458_v32 = vadd.f32 %v1457_v31, %v1434_v30 }
 0x3af   : > { %v1480_v34 = vadd.f32 %v1479_v33, %v1458_v32 }
 0x3b1   : > { %1787 = vrot.lane.b32.xlu0 %v1480_v34, %s2807_s14  ;;  %s2646_s14 = sshll.u32 %s2868_s25, 3 }
 0x3b2   : > { %s2573_s17 = scalar_lea.hbm %s3168_s6, %s2646_s14 }
 0x3b3   : > { %s2577_s20 = sshll.u32 %s2573_s17, 4  ;;  %s2578_s20 = int_to_ptr.hbm [resolvable:$true] %s2577_s20 }
 0x3b4   : > { %s2752_s28 = sshra.s32 %s2578_s20, 4  ;;  %s2753_s28 = int_to_ptr.hbm [resolvable:$true] %s2752_s28 }
 0x3b5   : > { %p2759_p0 = scmp.lt.s32.totalorder %s2753_s28, %s3168_s6 }
 0x3c1   : > { %v1585_v38 = vpop.f32.mrf.mxu1 }
 0x3c3   : > { %v1561_v37 = vpop.f32.mrf.mxu0 }
 0x3c7   : > { %v1511_v36 = vpop.f32.mrf.mxu2 }
 0x3ca   : > { %v1689_v48 = vpop.f32.mrf.mxu1 }
 0x3cb   : > { %v1663_v45 = vpop.f32.mrf.mxu0 }
 0x3cc   : > { %v1690_v51 = vadd.f32 %v1689_v48, %v1663_v45 }
 0x3cf   : > { %v1537_v35 = vpop.f32.mrf.mxu3  ;;  %v1609_v56 = vpop.f32.mrf.mxu2 }
 0x3d0   : > { %v1538_v39 = vadd.f32 %v1537_v35, %v1511_v36 }
 0x3d2   : > { %v1562_v41 = vadd.f32 %v1561_v37, %v1538_v39  ;;  %v1783_v60 = vpop.f32.mrf.mxu1 }
 0x3d3   : > { %v1761_v58 = vpop.f32.mrf.mxu0 }
 0x3d4   : > { %v1586_v42 = vadd.f32 %v1585_v38, %v1562_v41 }
 0x3d6   : > { %v1610_v44 = vadd.f32 %v1609_v56, %v1586_v42 }
 0x3d7   : > { %v1631_v46 = vpop.f32.mrf.mxu3  ;;  %v1713_v50 = vpop.f32.mrf.mxu2 }
 0x3d8   : > { %v1632_v47 = vadd.f32 %v1631_v46, %v1610_v44  ;;  %v1714_v53 = vadd.f32 %v1713_v50, %v1690_v51  ;;  %v2810_v50 = vmov 32.0  }
 0x3d9   : > { %2723 = vrcp.f32 %v2810_v50 }
 0x3da   : > { %1791 = vrot.lane.b32.xlu2 %v1632_v47, %s2808_s15 }
 0x3df   : > { %v1737_v54 = vpop.f32.mrf.mxu3  ;;  %v2724_v51 = vpop.eup %2723 }
 0x3e0   : > { %v1738_v55 = vadd.f32 %v1737_v54, %v1714_v53  ;;  %v2003_v53 = vmul.f32 32.0, %v2724_v51 }
 0x3e2   : > { %v1762_v59 = vadd.f32 %v1761_v58, %v1738_v55  ;;  %v2004_v54 = vsub.f32 1.0, %v2003_v53 }
 0x3e4   : > { %v1784_v49 = vadd.f32 %v1783_v60, %v1762_v59  ;;  %v2005_v55 = vmul.f32 %v2724_v51, %v2004_v54 }
 0x3e6   : > { %1795 = vrot.lane.b32.xlu0 %v1784_v49, %s2809_s16  ;;  %v2006_v58 = vadd.f32 %v2724_v51, %v2005_v55 }
 0x423   : > { %v1788_v25 = vpop.permute.xlu0 %1787 }
 0x424   : > { %v1798_v29 = vsel %vm471_vm1, %v1328_v27, %v1788_v25  ;;  %vm2007_vm1 = vweird.f32 %v2724_v51 }
 0x425   : > { %v3015_v59 = vsel %vm2007_vm1, %v2724_v51, %v2006_v58 }
 0x434   : > { %v1792_v28 = vpop.permute.xlu2 %1791 }
 0x435   : > { %v1800_v30 = vsel %vm1799_vm4, %v1798_v29, %v1792_v28 }
 0x458   : > { %v1796_v31 = vpop.permute.xlu0 %1795 }
 0x459   : > { %v1802_v32 = vsel %vm1801_vm5, %v1800_v30, %v1796_v31 }
 0x45a   : > { %v1810_v33 = vsel %vm254_vm0, %v1802_v32, 0 }
 0x45b   : > { %v1832_v34 = vand.u32 4294901760, %v1810_v33 }
 0x45d   : > { %v1833_v36 = vsub.f32 %v1810_v33, %v1832_v34  ;;  %1878 = vmatmul.f32.vlgmr.msrb.gmra.mxu3 %v1832_v34 }
 0x45f   : > { %1908 = vmatmul.f32.vlgmr.msra.gmra.mxu0 %v1833_v36  ;;  %v1834_v57 = vand.u32 4294901760, %v1833_v36 }
 0x461   : > { %1935 = vmatmul.f32.vlgmr.msra.gmra.mxu1 %v1834_v57  ;;  %v1835_v20 = vsub.f32 %v1833_v36, %v1834_v57 }
 0x463   : > { %v1836_v21 = vand.u32 4294901760, %v1835_v20  ;;  %v2046_v20 = vld [vmem:[%s3165_s3 + $0x18] sm:$0xff] }
 0x465   : > { %1837 = vmatmul.f32.vlgmr.msrb.gmra.mxu2 %v1836_v21  ;;  %1993 = vmatmul.f32.vlgmr.msra.gmra.mxu3 %v1832_v34  ;;  %v2045_v21 = vld [vmem:[%s3165_s3 + $0x10] sm:$0xff] }
 0x46d   : > { %1968 = vmatmul.f32.vlgmr.msra.gmra.mxu2 %v1832_v34 }
 0x4dc   : > { %v1909_v39 = vpop.f32.mrf.mxu0 }
 0x4de   : > { %v1936_v41 = vpop.f32.mrf.mxu1 }
 0x4e0   : > { %v1879_v23 = vpop.f32.mrf.mxu3 }
 0x4e8   : > { %v1838_v37 = vpop.f32.mrf.mxu2  ;;  %v1994_v46 = vpop.f32.mrf.mxu3 }
 0x4e9   : > { %v1839_v38 = vadd.f32 %v2699_v22, %v1838_v37  ;;  %v2064_v22 = vand.u32 4294901760, %v2046_v20 }
 0x4eb   : > { %v1880_v35 = vadd.f32 %v1879_v23, %v1839_v38  ;;  %v2066_v23 = vand.u32 4294901760, %v2045_v21  ;;  %v2094_v37 = vsub.f32 %v2046_v20, %v2064_v22  ;;  %2165 = vmatpush.msrb.mxu3 %v2064_v22  ;;  %2065 = vmatpush.msrb.mxu0 %v2064_v22  ;;  %v2267_v20 = vld [vmem:[%s3166_s4] sm:$0xff] }
 0x4ed   : > { %v1910_v56 = vadd.f32 %v1909_v39, %v1880_v35  ;;  %v2100_v38 = vsub.f32 %v2045_v21, %v2066_v23  ;;  %v2095_v35 = vand.u32 4294901760, %v2094_v37  ;;  %2136 = vmatpush.msrb.mxu2 %v2094_v37  ;;  %2167 = vmatpush.msrb.mxu3 %v2066_v23 }
 0x4ee   : > { %2067 = vmatpush.msrb.mxu0 %v2066_v23 }
 0x4ef   : > { %v1937_v42 = vadd.f32 %v1936_v41, %v1910_v56  ;;  %v2101_v39 = vand.u32 4294901760, %v2100_v38  ;;  %v2096_v56 = vsub.f32 %v2094_v37, %v2095_v35  ;;  %2139 = vmatpush.msrb.mxu2 %v2100_v38  ;;  %v2303_v37 = vand.u32 4294901760, %v2267_v20 }
 0x4f0   : > { %v1969_v44 = vpop.f32.mrf.mxu2 }
 0x4f1   : > { %v1970_v45 = vadd.f32 %v1969_v44, %v1937_v42  ;;  %v2102_v41 = vsub.f32 %v2100_v38, %v2101_v39  ;;  %v2097_v42 = vand.u32 4294901760, %v2096_v56  ;;  %v2365_v56 = vsub.f32 %v2267_v20, %v2303_v37 }
 0x4f3   : > { %v1995_v47 = vadd.f32 %v1994_v46, %v1970_v45  ;;  %v2103_v44 = vand.u32 4294901760, %v2102_v41  ;;  %2098 = vmatpush.msrb.mxu1 %v2097_v42  ;;  %v2044_v45 = vld [vmem:[%s3165_s3 + $0x8] sm:$0xff] }
 0x4f4   : > { %v2068_v46 = vand.u32 4294901760, %v2044_v45 }
 0x4f5   : > { %v1999_v48 = vsel %vm254_vm0, %v1995_v47, 0.0  ;;  %2104 = vmatpush.msrb.mxu1 %v2103_v44 }
 0x4f6   : > { %2000 = vadd.xlane.f32.xlu2 %v1999_v48  ;;  %v2106_v48 = vsub.f32 %v2044_v45, %v2068_v46  ;;  %2169 = vmatpush.msrb.mxu3 %v2068_v46  ;;  %v2366_v45 = vand.u32 4294901760, %v2365_v56 }
 0x4f7   : > { %2069 = vmatpush.msrb.mxu0 %v2068_v46 }
 0x4f8   : > { %v2107_v51 = vand.u32 4294901760, %v2106_v48  ;;  %2142 = vmatpush.msrb.mxu2 %v2106_v48 }
 0x4fa   : > { %v2108_v54 = vsub.f32 %v2106_v48, %v2107_v51 }
 0x4fc   : > { %v2109_v58 = vand.u32 4294901760, %v2108_v54 }
 0x4fe   : > { %2110 = vmatpush.msrb.mxu1 %v2109_v58 }
 0x569   : > { %v2001_v60 = vpop.xlane.xlu2 %2000 }
 0x56a   : > { %v2009_v49 = vmul.f32 %v3015_v59, %v2001_v60 }
 0x56c   : > { %v2010_v61 = vsub.f32 %v1995_v47, %v2009_v49  ;;  %v2043_v47 = vld [vmem:[%s3165_s3] sm:$0xff] }
 0x56d   : > { %v2070_v50 = vand.u32 4294901760, %v2043_v47 }
 0x56e   : > { %v2011_v62 = vmul.f32 %v2010_v61, %v2010_v61 }
 0x56f   : > { %v2112_v53 = vsub.f32 %v2043_v47, %v2070_v50  ;;  %2171 = vmatpush.msrb.mxu3 %v2070_v50  ;;  %2071 = vmatpush.msrb.mxu0 %v2070_v50  ;;  %v2367_v47 = vsub.f32 %v2365_v56, %v2366_v45 }
 0x570   : > { %v2012_v40 = vsel %vm254_vm0, %v2011_v62, 0.0 }
 0x571   : > { %2013 = vadd.xlane.f32.xlu1 %v2012_v40  ;;  %v2113_v55 = vand.u32 4294901760, %v2112_v53  ;;  %2145 = vmatpush.msrb.mxu2 %v2112_v53  ;;  %v2368_v48 = vand.u32 4294901760, %v2367_v47 }
 0x572   : > { %2194 = vmatpush.msra.mxu0 %v2095_v35 }
 0x573   : > { %v2114_v60 = vsub.f32 %v2112_v53, %v2113_v55 }
 0x574   : > { %2198 = vmatpush.msra.mxu0 %v2101_v39 }
 0x575   : > { %v2115_v49 = vand.u32 4294901760, %v2114_v60 }
 0x576   : > { %2202 = vmatpush.msra.mxu0 %v2107_v51 }
 0x577   : > { %2116 = vmatpush.msrb.mxu1 %v2115_v49 }
 0x578   : > { %2206 = vmatpush.msra.mxu0 %v2113_v55 }
 0x579   : > { %2225 = vmatpush.msra.mxu1 %v2064_v22 }
 0x57b   : > { %2227 = vmatpush.msra.mxu1 %v2066_v23 }
 0x57d   : > { %2229 = vmatpush.msra.mxu1 %v2068_v46 }
 0x57f   : > { %2231 = vmatpush.msra.mxu1 %v2070_v50 }
 0x58a   : > { %2244 = vrot.lane.b32.xlu1 %v2702_v16, %s2806_s13  ;;  %v2270_v16 = vld [vmem:[%s3166_s4 + $0x18] sm:$0xff] }
 0x5e4   : > { %v2014_v63 = vpop.xlane.xlu1 %2013 }
 0x5e5   : > { %v2015_v0 = vmul.f32 %v2014_v63, %v3015_v59 }
 0x5e7   : > { %v2016_v1 = vadd.f32 1e-05, %v2015_v0 }
 0x5e9   : > { %2725 = vrsqrt.f32 %v2016_v1  ;;  %vm2023_vm7 = vweird.f32 %v2016_v1 }
 0x5ea   : > { %2727 = vpow2.f32 %v2643_v52 }
 0x5ef   : > { %v2726_v2 = vpop.eup %2725 }
 0x5f0   : > { %v2018_v3 = vmul.f32 %v2726_v2, %v2016_v1  ;;  %vm2024_vm6 = vweird.f32 %v2726_v2  ;;  %v2728_v15 = vpop.eup %2727 }
 0x5f1   : > { %vm2025_vm8 = vmor %vm2023_vm7, %vm2024_vm6  ;;  %v446_v17 = vadd.f32 1.0, %v2728_v15 }
 0x5f2   : > { %v2019_v4 = vmul.f32 %v2726_v2, %v2018_v3  ;;  %v2274_v3 = vld [vmem:[%s3166_s4 + $0x38] sm:$0xff] }
 0x5f3   : > { %2729 = vrcp.f32 %v446_v17  ;;  %v458_v27 = vand.u32 2147483648, %v446_v17  ;;  %vm452_vm10 = vweird.f32 %v446_v17  ;;  %v456_v28 = vand.u32 2147483647, %v446_v17 }
 0x5f4   : > { %v2020_v5 = vmul.f32 0.5, %v2019_v4  ;;  %v3051_v4 = vand.u32 4294901760, %v2274_v3 }
 0x5f5   : > { %v459_v30 = vor.u32 1.1754944e-38, %v458_v27  ;;  %vm457_vm12 = vcmp.eq.f32.partialorder %v456_v28, 8.507059e+37 }
 0x5f6   : > { %v2021_v6 = vsub.f32 1.5, %v2020_v5  ;;  %v2273_v5 = vld [vmem:[%s3166_s4 + $0x30] sm:$0xff]  ;;  %2290 = vmatpush.msra.mxu2 %v3051_v4 }
 0x5f8   : > { %v2022_v7 = vmul.f32 %v2726_v2, %v2021_v6  ;;  %v3057_v6 = vsub.f32 %v2274_v3, %v3051_v4 }
 0x5f9   : > { %v2730_v18 = vpop.eup %2729 }
 0x5fa   : > { %v2026_v9 = vsel %vm2025_vm8, %v2726_v2, %v2022_v7  ;;  %v448_v19 = vmul.f32 %v2730_v18, %v446_v17  ;;  %vm453_vm9 = vweird.f32 %v2730_v18  ;;  %v3059_v7 = vand.u32 4294901760, %v2273_v5 }
 0x5fb   : > { %v2027_v10 = vmul.f32 %v2026_v9, %v2010_v61  ;;  %vm454_vm11 = vmor %vm452_vm10, %vm453_vm9  ;;  %v2324_v9 = vand.u32 4294901760, %v3057_v6 }
 0x5fc   : > { %v449_v24 = vsub.f32 1.0, %v448_v19  ;;  %2292 = vmatpush.msra.mxu2 %v3059_v7 }
 0x5fd   : > { %v2029_v12 = vmul.f32 %v2700_v8, %v2027_v10  ;;  %v2272_v8 = vld [vmem:[%s3166_s4 + $0x28] sm:$0xff]  ;;  %v3068_v10 = vsub.f32 %v2273_v5, %v3059_v7 }
 0x5fe   : > { %v450_v25 = vmul.f32 %v2730_v18, %v449_v24 }
 0x5ff   : > { %v2031_v13 = vadd.f32 %v2701_v11, %v2029_v12  ;;  %v3070_v11 = vand.u32 4294901760, %v2272_v8  ;;  %v2271_v12 = vld [vmem:[%s3166_s4 + $0x20] sm:$0xff] }
 0x600   : > { %v451_v26 = vadd.f32 %v2730_v18, %v450_v25  ;;  %v3083_v15 = vand.u32 4294901760, %v2271_v12  ;;  %v2297_v25 = vand.u32 4294901760, %v2270_v16 }
 0x601   : > { %2033 = vrot.lane.b32.xlu0 %v2031_v13, %s2802_s9  ;;  %v2325_v13 = vsub.f32 %v3057_v6, %v2324_v9  ;;  %v3081_v52 = vsub.f32 %v2272_v8, %v3070_v11  ;;  %2294 = vmatpush.msra.mxu2 %v3070_v11  ;;  %v2704_v8 = vld [vmem:[%s3167_s5 + $0x6] ss:$0 sm:$0xff] }
 0x602   : > { %v455_v29 = vsel %vm454_vm11, %v2730_v18, %v451_v26  ;;  %v2341_v24 = vsub.f32 %v2271_v12, %v3083_v15  ;;  %v2269_v26 = vld [vmem:[%s3166_s4 + $0x10] sm:$0xff] }
 0x603   : > { %v460_v31 = vsel %vm457_vm12, %v459_v30, %v455_v29  ;;  %v2326_v17 = vand.u32 4294901760, %v2325_v13  ;;  %v2336_v19 = vand.u32 4294901760, %v3081_v52  ;;  %2296 = vmatpush.msra.mxu2 %v3083_v15  ;;  %v2299_v29 = vand.u32 4294901760, %v2269_v26 }
 0x604   : > { %v2037_v32 = vsub.f32 1.0, %v460_v31  ;;  %v2347_v30 = vsub.f32 %v2270_v16, %v2297_v25 }
 0x605   : > { %2327 = vmatpush.msra.mxu3 %v2326_v17  ;;  %v2337_v28 = vsub.f32 %v3081_v52, %v2336_v19  ;;  %2298 = vmatpush.msra.mxu2 %v2297_v25 }
 0x607   : > { %2300 = vmatpush.msra.mxu2 %v2299_v29 }
 0x609   : > { %2038 = vrot.lane.b32.xlu0 %v2737_v14, %s2802_s9  ;;  %v2330_v14 = vand.u32 4294901760, %v3068_v10 }
 0x60b   : > { %v2331_v18 = vsub.f32 %v3068_v10, %v2330_v14 }
 0x60d   : > { %v2332_v27 = vand.u32 4294901760, %v2331_v18 }
 0x60f   : > { %2333 = vmatpush.msra.mxu3 %v2332_v27 }
 0x673   : > { %v2034_v43 = vpop.permute.xlu0 %2033 }
 0x674   : > { %v2036_v34 = vmul.f32 %v2034_v43, %v460_v31  ;;  %v2342_v43 = vand.u32 4294901760, %v2341_v24  ;;  %v2268_v31 = vld [vmem:[%s3166_s4 + $0x8] sm:$0xff] }
 0x67b   : > { %v2039_v33 = vpop.permute.xlu0 %2038 }
 0x67c   : > { %v2041_v36 = vmul.f32 %v2039_v33, %v2037_v32  ;;  %v2338_v32 = vand.u32 4294901760, %v2337_v28  ;;  %v2343_v33 = vsub.f32 %v2341_v24, %v2342_v43 }
 0x67e   : > { %v2042_v57 = vadd.f32 %v2041_v36, %v2036_v34  ;;  %v2353_v34 = vsub.f32 %v2269_v26, %v2299_v29  ;;  %v2301_v36 = vand.u32 4294901760, %v2268_v31  ;;  %2339 = vmatpush.msra.mxu3 %v2338_v32  ;;  %v2344_v21 = vand.u32 4294901760, %v2343_v33 }
 0x680   : > { %2552 = vrot.lane.b32.xlu1 %v2042_v57, %s2802_s9  ;;  %2048 = vrot.lane.b32.xlu0 %v2042_v57, %s2811_s26  ;;  %v2348_v57 = vand.u32 4294901760, %v2347_v30  ;;  %v2354_v22 = vand.u32 4294901760, %v2353_v34  ;;  %v2359_v23 = vsub.f32 %v2268_v31, %v2301_v36  ;;  %s240_s9 = sand.u32 1, %s2792_s22  }
 0x681   : > { %2302 = vmatpush.msra.mxu2 %v2301_v36  ;;  %2345 = vmatpush.msra.mxu3 %v2344_v21  ;;  %v2705_v21 = vld [vmem:[%s3167_s5 + $0x7] ss:$0 sm:$0xff]  ;;  %s2641_s12 = sshll.u32 %s240_s9, 3  ;;  %s2563_s26 = scalar_lea.sflag [#allocation3], %s240_s9 }
 0x682   : > { %v2349_v38 = vsub.f32 %v2347_v30, %v2348_v57  ;;  %v2355_v35 = vsub.f32 %v2353_v34, %v2354_v22  ;;  %v2360_v39 = vand.u32 4294901760, %v2359_v23  ;;  %s242_s18 = scalar_lea.vmem [#allocation2], %s2641_s12 }
 0x683   : > { %2304 = vmatpush.msra.mxu2 %v2303_v37  ;;  %s2575_s19 = sshll.u32 %s242_s18, 4  ;;  %s2576_s19 = int_to_ptr.vmem [resolvable:$true] %s2575_s19 }
 0x684   : > { %v2350_v41 = vand.u32 4294901760, %v2349_v38  ;;  %v2356_v42 = vand.u32 4294901760, %v2355_v35  ;;  %v2361_v44 = vsub.f32 %v2359_v23, %v2360_v39  ;;  %v2245_v35 = vpop.permute.xlu1 %2244 }
 0x686   : > { %2351 = vmatpush.msra.mxu3 %v2350_v41  ;;  %v2362_v46 = vand.u32 4294901760, %v2361_v44 }
 0x688   : > { %2357 = vmatpush.msra.mxu3 %v2356_v42 }
 0x68a   : > { %2363 = vmatpush.msra.mxu3 %v2362_v46 }
 0x68c   : > { %2369 = vmatpush.msra.mxu3 %v2368_v48 }
 0x6f2   : > { %v2049_v61 = vpop.permute.xlu0 %2048 }
 0x6f3   : > { %v2050_v62 = vsel %vm254_vm0, %v2049_v61, 0 }
 0x6f4   : > { %v2072_v40 = vand.u32 4294901760, %v2050_v62 }
 0x6f6   : > { %v2073_v63 = vsub.f32 %v2050_v62, %v2072_v40  ;;  %2118 = vmatmul.f32.vlgmr.msrb.gmra.mxu1 %v2072_v40  ;;  %v2703_v62 = vld [vmem:[%s3167_s5 + $0x4] ss:$0 sm:$0xff] }
 0x6f7   : > { %2422 = vmatpush.msrb.mxu1 %v3051_v4 }
 0x6f8   : > { %v2074_v0 = vand.u32 4294901760, %v2073_v63  ;;  %2148 = vmatmul.f32.vlgmr.msrb.gmra.mxu2 %v2073_v63 }
 0x6f9   : > { %2424 = vmatpush.msrb.mxu1 %v3059_v7  ;;  %2455 = vmatpush.msrb.mxu2 %v2324_v9 }
 0x6fa   : > { %v2075_v1 = vsub.f32 %v2073_v63, %v2074_v0  ;;  %2175 = vmatmul.f32.vlgmr.msrb.gmra.mxu3 %v2074_v0 }
 0x6fb   : > { %2426 = vmatpush.msrb.mxu1 %v3070_v11  ;;  %2459 = vmatpush.msrb.mxu2 %v2330_v14 }
 0x6fc   : > { %v2076_v2 = vand.u32 4294901760, %v2075_v1  ;;  %2498 = vmatpush.msrb.mxu3 %v3051_v4 }
 0x6fd   : > { %2428 = vmatpush.msrb.mxu1 %v3083_v15  ;;  %2463 = vmatpush.msrb.mxu2 %v2336_v19 }
 0x6fe   : > { %2077 = vmatmul.f32.vlgmr.msrb.gmra.mxu0 %v2076_v2  ;;  %2233 = vmatmul.f32.vlgmr.msra.gmra.mxu1 %v2072_v40 }
 0x6ff   : > { %2385 = vmatpush.msrb.mxu0 %v3057_v6  ;;  %2430 = vmatpush.msrb.mxu1 %v2297_v25 }
 0x700   : > { %2467 = vmatpush.msrb.mxu2 %v2342_v43  ;;  %2500 = vmatpush.msrb.mxu3 %v3059_v7 }
 0x701   : > { %2388 = vmatpush.msrb.mxu0 %v3068_v10  ;;  %2432 = vmatpush.msrb.mxu1 %v2299_v29 }
 0x702   : > { %2471 = vmatpush.msrb.mxu2 %v2348_v57  ;;  %2502 = vmatpush.msrb.mxu3 %v3070_v11 }
 0x703   : > { %2391 = vmatpush.msrb.mxu0 %v3081_v52  ;;  %2434 = vmatpush.msrb.mxu1 %v2301_v36 }
 0x704   : > { %2475 = vmatpush.msrb.mxu2 %v2354_v22  ;;  %2504 = vmatpush.msrb.mxu3 %v3083_v15 }
 0x705   : > { %2394 = vmatpush.msrb.mxu0 %v2341_v24  ;;  %2436 = vmatpush.msrb.mxu1 %v2303_v37 }
 0x706   : > { %2208 = vmatmul.f32.vlgmr.msra.gmra.mxu0 %v2072_v40  ;;  %2479 = vmatpush.msrb.mxu2 %v2360_v39 }
 0x707   : > { %2397 = vmatpush.msrb.mxu0 %v2347_v30  ;;  %2506 = vmatpush.msrb.mxu3 %v2297_v25 }
 0x708   : > { %2483 = vmatpush.msrb.mxu2 %v2366_v45 }
 0x709   : > { %2400 = vmatpush.msrb.mxu0 %v2353_v34  ;;  %2508 = vmatpush.msrb.mxu3 %v2299_v29 }
 0x70b   : > { %2403 = vmatpush.msrb.mxu0 %v2359_v23  ;;  %2510 = vmatpush.msrb.mxu3 %v2301_v36 }
 0x70d   : > { %2406 = vmatpush.msrb.mxu0 %v2365_v56  ;;  %2512 = vmatpush.msrb.mxu3 %v2303_v37 }
 0x773   : > { %v2119_v50 = vpop.f32.mrf.mxu1 }
 0x77b   : > { %v2078_v51 = vpop.f32.mrf.mxu0  ;;  %v2149_v54 = vpop.f32.mrf.mxu2 }
 0x77c   : > { %v2120_v53 = vadd.f32 %v2119_v50, %v2078_v51  ;;  %v2234_v40 = vpop.f32.mrf.mxu1 }
 0x77d   : > { %v2176_v58 = vpop.f32.mrf.mxu3 }
 0x77e   : > { %v2150_v55 = vadd.f32 %v2149_v54, %v2120_v53 }
 0x780   : > { %v2177_v60 = vadd.f32 %v2176_v58, %v2150_v55 }
 0x783   : > { %v2209_v49 = vpop.f32.mrf.mxu0 }
 0x784   : > { %v2210_v61 = vadd.f32 %v2209_v49, %v2177_v60  ;;  %v2553_v60 = vpop.permute.xlu1 %2552 }
 0x786   : > { %v2235_v63 = vadd.f32 %v2234_v40, %v2210_v61 }
 0x788   : > { %v2239_v0 = vadd.f32 %v2703_v62, %v2235_v63  ;;  %v2247_v39 = vadd.f32 %v2245_v35, %v2235_v63 }
 0x78a   : > { %v2240_v1 = vmax.f32 %v2239_v0, 0.0  ;;  %v2644_v56 = vmul.f32 -1.442695, %v2247_v39 }
 0x78c   : > { %v2279_v2 = vsel %vm2277_vm13, %v2240_v1, 0 }
 0x78d   : > { %v2305_v3 = vand.u32 4294901760, %v2279_v2 }
 0x78f   : > { %2371 = vmatmul.f32.vlgmr.msra.gmra.mxu3 %v2305_v3  ;;  %v2306_v4 = vsub.f32 %v2279_v2, %v2305_v3 }
 0x791   : > { %2409 = vmatmul.f32.vlgmr.msrb.gmra.mxu0 %v2306_v4  ;;  %v2307_v5 = vand.u32 4294901760, %v2306_v4 }
 0x793   : > { %2440 = vmatmul.f32.vlgmr.msrb.gmra.mxu1 %v2307_v5  ;;  %v2308_v6 = vsub.f32 %v2306_v4, %v2307_v5 }
 0x795   : > { %v2309_v7 = vand.u32 4294901760, %v2308_v6 }
 0x797   : > { %2310 = vmatmul.f32.vlgmr.msra.gmra.mxu2 %v2309_v7  ;;  %2514 = vmatmul.f32.vlgmr.msrb.gmra.mxu3 %v2305_v3 }
 0x79f   : > { %2485 = vmatmul.f32.vlgmr.msrb.gmra.mxu2 %v2305_v3 }
 0x80e   : > { %v2410_v13 = vpop.f32.mrf.mxu0 }
 0x810   : > { %v2441_v52 = vpop.f32.mrf.mxu1 }
 0x812   : > { %v2372_v9 = vpop.f32.mrf.mxu3 }
 0x81a   : > { %v2311_v10 = vpop.f32.mrf.mxu2  ;;  %v2515_v18 = vpop.f32.mrf.mxu3 }
 0x81b   : > { %v2312_v11 = vadd.f32 %v2704_v8, %v2311_v10 }
 0x81d   : > { %v2373_v12 = vadd.f32 %v2372_v9, %v2312_v11 }
 0x81f   : > { %v2411_v14 = vadd.f32 %v2410_v13, %v2373_v12 }
 0x821   : > { %v2442_v15 = vadd.f32 %v2441_v52, %v2411_v14 }
 0x822   : > { %v2486_v16 = vpop.f32.mrf.mxu2 }
 0x823   : > { %v2487_v17 = vadd.f32 %v2486_v16, %v2442_v15 }
 0x825   : > { %v2516_v19 = vadd.f32 %v2515_v18, %v2487_v17 }
 0x827   : > { %v2520_v24 = vsel %vm254_vm0, %v2516_v19, 0.0 }
 0x828   : > { %2521 = vadd.xlane.f32.xlu0 %v2520_v24 }
 0x89b   : > { %v2522_v25 = vpop.xlane.xlu0 %2521 }
 0x89c   : > { %v2523_v26 = vmul.f32 %v2522_v25, %v3015_v59 }
 0x89e   : > { %v2524_v27 = vsub.f32 %v2516_v19, %v2523_v26 }
 0x8a0   : > { %v2525_v28 = vmul.f32 %v2524_v27, %v2524_v27 }
 0x8a2   : > { %v2526_v43 = vsel %vm254_vm0, %v2525_v28, 0.0 }
 0x8a3   : > { %2527 = vadd.xlane.f32.xlu2 %v2526_v43 }
 0x916   : > { %v2528_v29 = vpop.xlane.xlu2 %2527 }
 0x917   : > { %v2529_v30 = vmul.f32 %v2528_v29, %v3015_v59  ;;  %v2706_v59 = vld [vmem:[%s3167_s5 + $0x8] ss:$0 sm:$0xff] }
 0x919   : > { %v2530_v31 = vadd.f32 1e-05, %v2529_v30 }
 0x91b   : > { %2731 = vrsqrt.f32 %v2530_v31  ;;  %vm2537_vm15 = vweird.f32 %v2530_v31 }
 0x91c   : > { %2733 = vpow2.f32 %v2644_v56 }
 0x921   : > { %v2732_v32 = vpop.eup %2731 }
 0x922   : > { %v2532_v33 = vmul.f32 %v2732_v32, %v2530_v31  ;;  %vm2538_vm14 = vweird.f32 %v2732_v32  ;;  %v2734_v41 = vpop.eup %2733 }
 0x923   : > { %vm2539_vm2 = vmor %vm2537_vm15, %vm2538_vm14  ;;  %v2251_v42 = vadd.f32 1.0, %v2734_v41 }
 0x924   : > { %v2533_v34 = vmul.f32 %v2732_v32, %v2532_v33 }
 0x925   : > { %2735 = vrcp.f32 %v2251_v42  ;;  %v2263_v50 = vand.u32 2147483648, %v2251_v42  ;;  %vm2257_vm4 = vweird.f32 %v2251_v42  ;;  %v2261_v51 = vand.u32 2147483647, %v2251_v42 }
 0x926   : > { %v2534_v36 = vmul.f32 0.5, %v2533_v34 }
 0x927   : > { %v2264_v54 = vor.u32 1.1754944e-38, %v2263_v50  ;;  %vm2262_vm1 = vcmp.eq.f32.partialorder %v2261_v51, 8.507059e+37 }
 0x928   : > { %v2535_v57 = vsub.f32 1.5, %v2534_v36 }
 0x92a   : > { %v2536_v20 = vmul.f32 %v2732_v32, %v2535_v57 }
 0x92b   : > { %v2736_v44 = vpop.eup %2735 }
 0x92c   : > { %v2540_v22 = vsel %vm2539_vm2, %v2732_v32, %v2536_v20  ;;  %v2253_v45 = vmul.f32 %v2736_v44, %v2251_v42  ;;  %vm2258_vm3 = vweird.f32 %v2736_v44 }
 0x92d   : > { %v2541_v23 = vmul.f32 %v2540_v22, %v2524_v27  ;;  %vm2259_vm5 = vmor %vm2257_vm4, %vm2258_vm3 }
 0x92e   : > { %v2254_v46 = vsub.f32 1.0, %v2253_v45 }
 0x92f   : > { %v2543_v37 = vmul.f32 %v2705_v21, %v2541_v23 }
 0x930   : > { %v2255_v47 = vmul.f32 %v2736_v44, %v2254_v46 }
 0x931   : > { %v2545_v38 = vadd.f32 %v2706_v59, %v2543_v37 }
 0x932   : > { %v2256_v48 = vadd.f32 %v2736_v44, %v2255_v47 }
 0x933   : > { %2547 = vrot.lane.b32.xlu2 %v2545_v38, %s2806_s13 }
 0x934   : > { %v2260_v53 = vsel %vm2259_vm5, %v2736_v44, %v2256_v48 }
 0x935   : > { %v2265_v55 = vsel %vm2262_vm1, %v2264_v54, %v2260_v53 }
 0x936   : > { %v2551_v58 = vsub.f32 1.0, %v2265_v55 }
 0x938   : > { %v2555_v61 = vmul.f32 %v2553_v60, %v2551_v58 }
 0x98d   : > { %v2548_v49 = vpop.permute.xlu2 %2547 }
 0x98e   : > { %v2550_v62 = vmul.f32 %v2548_v49, %v2265_v55 }
 0x990   : > { %v2556_v40 = vadd.f32 %v2555_v61, %v2550_v62 }
 0x992   : > { %2558 = vrot.lane.b32.xlu0 %v2556_v40, %s2806_s13  ;;  %s2754_s13 = scalar_lea.hbm %s2753_s28, 8 }
 0x993   : > { %p2755_p11 = scmp.ne.s32.totalorder %s2753_s28, %s2754_s13  ;;  %p2760_p1 = scmp.lt.s32.totalorder %s2758_s10, %s2754_s13 }
 0x995   : > { %p2756_p12 = pnand %p2755_p11, %p2885_p5  ;;  %p2761_p2 = por %p2760_p1, %p2759_p0 }
 0x997   : > { %p2757_p13 = pneg %p2756_p12 }
 0x999   : > { %p2762_p3 = pnand %p2761_p2, %p2757_p13 }
 0xa04   : > { %v2559_v63 = vpop.permute.xlu0 %2558 }
 0xa05   : > { %2561 = vst.msk [vmem:[%s242_s18] sm:$0xff] %vm254_vm0, %v2559_v63 }
 0xa06   : > { %2765 = shalt.err (!%p2762_p3)
}
 0xa07   : > { %2649 = dma.vmem_to_hbm [thread:$0]  (%p2885_p5), %s2576_s19, 128, %s2578_s20, %s2563_s26  }
 0xa08 PF: > { %p2655_p4 = scmp.ge.s32.totalorder %s2800_s24, 2  ;;  %s2589_s9 = sand.u32 1, %s2788_s21  }
 0xa09   : > { %s2590_s14 = scalar_lea.sflag [#allocation3], %s2589_s9 }
 0xa0a   : > { %p2652_p7 = pnand %p2655_p4, %p2889_p6 }
 0xa0c   : > { %p2653_p8 = pneg %p2652_p7 }
 0xa0e   : > { %2783 = dma.done.wait (%p2653_p8), %s2590_s14, 128  }
 0xa0f   : > { %2785 = vsyncadd (%p2653_p8), %s2590_s14, 4294967168  ;;  %p16_p9 = scmp.ge.s32.totalorder %s2872_s27, 4   ;;  %s3171_s21 = smov %s2792_s22 }
 0xa10   : > { %s3172_s22 = smov %s2796_s23  ;;  %s3173_s23 = smov %s2883_s30 }
 0xa11   : > { %s3174_s24 = smov %s2872_s27  ;;  %18 = sbr.rel (!%p16_p9) target bundleno = 3 (0x3), region = 79 }
 0xa16   :  { %2596 = vsyncpa [#allocation3], 1 }
 0xa17   :  { %2598 = vsyncpa [#allocation3 + $0x1], 1 }

</bundles_post_ra>
